<compile_context>
chip_gen: v7x
topology: tpu7x:2x2x1
jax: 0.10.0
libtpu: 0.0.40
codegen_flags: <defaults>
</compile_context>

<pallas_src>
import functools
import math

import numpy as np
import jax
import jax.numpy as jnp
from jax import lax
from jax.experimental import pallas as pl
from jax.experimental.pallas import tpu as pltpu

# ----------------------------- configuration -----------------------------
D_MODEL = 8
SSM_RATIO = 2.0
D_INNER = int(SSM_RATIO * D_MODEL)        # 16
D_STATE = 4
D_CONV = 4
DT_RANK = math.ceil(D_MODEL / 16)         # 1
R2N = DT_RANK + 2 * D_STATE               # 9
BATCH = 2
SEQ_LEN = D_INNER                         # reference `out + f` broadcast
                                          # requires seq_len == d_inner
PROMPT_DIM = 512


# ------------------- packed-constant slab layout (static) -------------------
def _const_layout():
  BL = BATCH * SEQ_LEN
  BLe = BATCH * (SEQ_LEN + 2)
  NDn = D_STATE * D_INNER
  blocks = [
      ("wprt",    PROMPT_DIM, D_INNER),   # prompt_proj.weight.T
      ("bprr",    1, D_INNER),            # prompt_proj.bias
      ("win_x",   D_MODEL, D_INNER),      # in_proj (x half), transposed
      ("win_z",   D_MODEL, D_INNER),      # in_proj (z half), transposed
      ("shiftm",  D_CONV * BL, BL),       # K stacked banded causal shifts
      ("wconv",   D_CONV, D_INNER),       # depthwise conv taps
      ("bconv",   1, D_INNER),
      ("sx2",     2 * BLe, BL),           # conv rows -> scan rows (fwd+bwd)
      ("sf2",     2 * BLe, BATCH),        # prompt -> scan rows (both ends)
      ("wxp",     D_INNER, R2N),          # x_proj.weight.T
      ("wdtp",    R2N, D_INNER),          # dt_proj folded (zeros on B/C cols)
      ("dtb",     1, D_INNER),            # dt_projs.bias
      ("wa",      D_INNER, NDn),          # channel replicator * A  (delta->dA)
      ("exd",     D_INNER, NDn),          # channel replicator
      ("exsb",    R2N, NDn),              # x_dbl -> B_n replicated
      ("exsc",    R2N, NDn),              # x_dbl -> C_n replicated
      ("ds",      1, D_INNER),            # D skip
      ("lnw",     1, D_INNER),            # out_norm weight
      ("lnb",     1, D_INNER),            # out_norm bias
      ("red",     NDn, D_INNER),          # reduce over states
      ("maskblk", 2 * BLe, 2 * BLe),      # block-diag [causal ; anti-causal]
      ("selfb",   BL, 2 * BLe),           # interior rows of fwd & bwd, summed
      ("selb",    BL, BATCH),             # batch-replicate f_rows to BL rows
      ("diag",    BL, D_INNER),           # one-hot lane pick (needs L == Dn)
      ("wout",    D_INNER, D_MODEL),      # out_proj.weight.T
  ]
  offs, r = {}, 0
  for name, h, w in blocks:
    assert w <= 128
    offs[name] = (r, h, w)
    r += -(-h // 8) * 8                   # 8-sublane align every block
  return offs, r


_CONST_OFFS, _CONST_ROWS = _const_layout()
_CONST_LANES = 128


# ------------------------------ fused kernel ------------------------------
def _fsmamba_kernel(x_ref, fp_ref, c_ref, o_ref, *, offs, B, L, Dn, K):
  f32 = jnp.float32
  BL = B * L

  def C(name):
    r0, h, w = offs[name]
    return c_ref[r0:r0 + h, 0:w]          # static, sublane-aligned load

  # ---- prompt Linear: f_rows[b, d] (single K=512 matmul, no duplicate) ----
  f_rows = jnp.dot(fp_ref[...], C("wprt"), preferred_element_type=f32) + C("bprr")

  # ---- in_proj (weights pre-split host-side -> no lane slicing) ----
  x = x_ref[...]                                                   # (BL, dm)
  x_in = jnp.dot(x, C("win_x"), preferred_element_type=f32)        # (BL, Dn)
  z = jnp.dot(x, C("win_z"), preferred_element_type=f32)           # (BL, Dn)

  # ---- causal depthwise conv1d + SiLU ----
  # K shifted copies of x_in via ONE banded matmul (causal + batch-boundary
  # zeroing baked into the host-built shift matrices). taps[k*BL+i] = x_in[i-(K-1-k)].
  taps = jnp.dot(C("shiftm"), x_in, preferred_element_type=f32)    # (K*BL, Dn)
  wconv = C("wconv")                                               # (K, Dn)
  acc = jnp.zeros((BL, Dn), f32)
  for k in range(K):                                               # K=4 static
    acc = acc + wconv[k:k + 1, :] * taps[k * BL:(k + 1) * BL, :]
  acc = acc + C("bconv")
  xc = acc * pl.reciprocal(1.0 + jnp.exp(-acc), approx=True)       # SiLU (EUP)

  # ---- scan rows [prompt, x_0..x_{L-1}, prompt] per batch, duplicated for the
  #      stacked fwd/bwd scans, via matmul gathers (no scratch, no unaligned IO)
  u = (jnp.dot(C("sx2"), xc, preferred_element_type=f32)
       + jnp.dot(C("sf2"), f_rows, preferred_element_type=f32))    # (2*BLe, Dn)

  # ---- x_proj / dt_proj / softplus ----
  x_dbl = jnp.dot(u, C("wxp"), preferred_element_type=f32)         # (2*BLe, R+2N)
  dt_pre = jnp.dot(x_dbl, C("wdtp"), preferred_element_type=f32) + C("dtb")
  # stable softplus (jnp.log1p would give last-bit parity; log(1+e) is enough)
  delta = jnp.maximum(dt_pre, 0.0) + jnp.log(1.0 + jnp.exp(-jnp.abs(dt_pre)))

  du = delta * u
  y_skip = C("ds") * u                                             # D skip

  # ---- state-batched scan terms, lanes grouped as [n*Dn : (n+1)*Dn] ----
  G = jnp.dot(delta, C("wa"), preferred_element_type=f32)          # delta*A_n
  DBU = (jnp.dot(du, C("exd"), preferred_element_type=f32)
         * jnp.dot(x_dbl, C("exsb"), preferred_element_type=f32))  # delta*B_n*u
  cs_rep = jnp.dot(x_dbl, C("exsc"), preferred_element_type=f32)   # C_n replicated

  # ---- fwd(causal)+bwd(anti-causal) scans stacked along sublanes: exact
  #      recurrence as TWO masked prefix-sum matmuls over all N states at once.
  # TODO(synk): exp(-S) grows with L*|delta*A|; fine at Le=18, chunk the scan
  # before scaling the sequence length.
  mask = C("maskblk")                                              # (2*BLe, 2*BLe)
  S = jnp.dot(mask, G, preferred_element_type=f32)
  H = jnp.exp(S) * jnp.dot(mask, jnp.exp(-S) * DBU, preferred_element_type=f32)
  y = y_skip + jnp.dot(cs_rep * H, C("red"), preferred_element_type=f32)  # (2*BLe, Dn)

  # ---- LayerNorm: single fused pass over fwd+bwd rows ----
  m = jnp.mean(y, axis=-1, keepdims=True)
  yc = y - m
  v = jnp.mean(yc * yc, axis=-1, keepdims=True)
  y = yc * lax.rsqrt(v + 1e-5) * C("lnw") + C("lnb")

  # ---- combine (yf + yb) on interior rows, gate with z, out_proj, + f ----
  tb = jnp.dot(C("selfb"), y, preferred_element_type=f32) * z      # (BL, Dn)
  f_add = jnp.sum(jnp.dot(C("selb"), f_rows, preferred_element_type=f32)
                  * C("diag"), axis=-1, keepdims=True)             # (BL, 1)
  o_ref[...] = (jnp.dot(tb, C("wout"), preferred_element_type=f32)
                + f_add).astype(o_ref.dtype)


# ------------------------------- wrapper -------------------------------
@jax.jit
def fsmamba_forward(x, f_img, const):
  b, L, dm = x.shape
  assert (b, L, dm) == (BATCH, SEQ_LEN, D_MODEL)
  assert L == D_INNER, "reference `out + f` broadcast requires seq_len == d_inner"

  # prompt branch glue: AdaptiveAvgPool2d((1,1)) + flatten (tiny XLA reduce);
  # everything else runs inside the single fused Pallas kernel.
  f_pool = jnp.mean(f_img, axis=(2, 3)).astype(jnp.float32)        # (B, 512)

  inputs = [x.reshape(b * L, dm).astype(jnp.float32), f_pool, const]
  kern = functools.partial(_fsmamba_kernel, offs=_CONST_OFFS,
                           B=b, L=L, Dn=D_INNER, K=D_CONV)
  out = pl.pallas_call(
      kern,
      out_shape=jax.ShapeDtypeStruct((b * L, dm), jnp.float32),
      grid=(1,),
      in_specs=[pl.BlockSpec(a.shape, lambda i: (0, 0)) for a in inputs],
      out_specs=pl.BlockSpec((b * L, dm), lambda i: (0, 0)),
      # TODO(synk): at production batch sizes add a leading "parallel" grid axis
      # over batch so the two v7x TensorCores split the work; pointless at B=2.
      compiler_params=pltpu.CompilerParams(dimension_semantics=("arbitrary",)),
  )(*inputs)
  return out.reshape(b, L, dm)


# --------------------------- deterministic params ----------------------------
def build_constants(key):
  """Random FSmamba parameters (deterministic) + static structural matrices,
  packed into ONE (rows, 128) f32 slab -> a single constant DMA per call."""
  f32 = np.float32
  B, L, Dn, N, K, R, dm = BATCH, SEQ_LEN, D_INNER, D_STATE, D_CONV, DT_RANK, D_MODEL
  BL, Le = B * L, L + 2
  BLe = B * Le
  NDn = N * Dn

  ks = jax.random.split(key, 8)
  w_in = np.asarray(jax.random.normal(ks[0], (2 * Dn, dm)) * 0.1, f32)
  w_conv = np.asarray(jax.random.normal(ks[1], (Dn, 1, K)) * 0.2, f32)   # torch layout
  b_conv = np.asarray(jax.random.normal(ks[2], (Dn,)) * 0.05, f32)
  w_xproj = np.asarray(jax.random.normal(ks[3], (R2N, Dn)) / math.sqrt(Dn), f32)

  dt_init_std = R ** -0.5
  w_dt = np.asarray(jax.random.uniform(ks[4], (Dn, R),
                                       minval=-dt_init_std, maxval=dt_init_std), f32)
  dt = np.asarray(jnp.exp(jax.random.uniform(ks[5], (Dn,))
                          * (math.log(0.1) - math.log(0.001)) + math.log(0.001)), f32)
  dt = np.maximum(dt, 1e-4)
  inv_dt = dt + np.log(-np.expm1(-dt))                     # dt_projs.bias
  A = -np.tile(np.arange(1, N + 1, dtype=f32), (Dn, 1))    # -exp(A_log) == -(n+1)
  w_prompt = np.asarray(jax.random.normal(ks[6], (Dn, PROMPT_DIM))
                        * math.sqrt(2.0 / Dn), f32)
  b_prompt = np.zeros((Dn,), f32)
  w_out = np.asarray(jax.random.normal(ks[7], (dm, Dn)) * 0.1, f32)

  # ---- static structural matrices ----
  idx = np.arange(BLe)
  bi, pi = idx // Le, idx % Le
  same = bi[:, None] == bi[None, :]
  mask_f = (same & (pi[None, :] <= pi[:, None])).astype(f32)   # causal
  mask_b = (same & (pi[None, :] >= pi[:, None])).astype(f32)   # anti-causal
  maskblk = np.zeros((2 * BLe, 2 * BLe), f32)
  maskblk[:BLe, :BLe] = mask_f
  maskblk[BLe:, BLe:] = mask_b

  sx = np.zeros((BLe, BL), f32)
  sf = np.zeros((BLe, B), f32)
  selfb = np.zeros((BL, 2 * BLe), f32)
  selb = np.zeros((BL, B), f32)
  diag = np.zeros((BL, Dn), f32)
  for b_ in range(B):
    sf[b_ * Le, b_] = 1.0                    # leading prompt (forward scan)
    sf[b_ * Le + Le - 1, b_] = 1.0           # trailing prompt (backward scan)
    for l in range(L):
      sx[b_ * Le + 1 + l, b_ * L + l] = 1.0
      selfb[b_ * L + l, b_ * Le + 1 + l] = 1.0               # yf interior
      selfb[b_ * L + l, BLe + b_ * Le + 1 + l] = 1.0         # + yb interior
      selb[b_ * L + l, b_] = 1.0
      diag[b_ * L + l, l] = 1.0              # requires L == Dn (ref broadcast)
  sx2 = np.concatenate([sx, sx], axis=0)
  sf2 = np.concatenate([sf, sf], axis=0)

  shiftm = np.zeros((K * BL, BL), f32)       # banded causal shifts, per tap
  for k in range(K):
    shift = K - 1 - k
    for i in range(BL):
      if i % L >= shift:
        shiftm[k * BL + i, i - shift] = 1.0

  exd = np.tile(np.eye(Dn, dtype=f32), (1, N))               # (Dn, N*Dn)
  red = np.ascontiguousarray(exd.T)                          # (N*Dn, Dn)
  exsb = np.zeros((R2N, NDn), f32)
  exsc = np.zeros((R2N, NDn), f32)
  for n in range(N):
    exsb[R + n, n * Dn:(n + 1) * Dn] = 1.0
    exsc[R + N + n, n * Dn:(n + 1) * Dn] = 1.0
  a_flat = np.ascontiguousarray(A.T).reshape(1, NDn)         # A[d,n] at lane n*Dn+d
  wa = exd * a_flat                                          # fold A into replicator

  wdtp = np.zeros((R2N, Dn), f32)
  wdtp[:R, :] = w_dt.T                                       # x_dbl -> dt, one matmul

  blocks = {
      "wprt": w_prompt.T, "bprr": b_prompt[None, :],
      "win_x": w_in[:Dn].T, "win_z": w_in[Dn:].T,
      "shiftm": shiftm, "wconv": w_conv[:, 0, :].T, "bconv": b_conv[None, :],
      "sx2": sx2, "sf2": sf2,
      "wxp": w_xproj.T, "wdtp": wdtp, "dtb": inv_dt[None, :],
      "wa": wa, "exd": exd, "exsb": exsb, "exsc": exsc,
      "ds": np.ones((1, Dn), f32),
      "lnw": np.ones((1, Dn), f32), "lnb": np.zeros((1, Dn), f32),
      "red": red, "maskblk": maskblk, "selfb": selfb, "selb": selb,
      "diag": diag, "wout": w_out.T,
  }

  packed = np.zeros((_CONST_ROWS, _CONST_LANES), f32)
  for name, (r0, h, w) in _CONST_OFFS.items():
    a = np.asarray(blocks[name], f32)
    assert a.shape == (h, w), (name, a.shape, (h, w))
    packed[r0:r0 + h, :w] = a
  return jnp.asarray(packed)


if __name__ == "__main__":
  key = jax.random.PRNGKey(0)
  kx, kf, kp = jax.random.split(key, 3)
  const = build_constants(kp)

  x = jax.random.normal(kx, (BATCH, SEQ_LEN, D_MODEL), jnp.float32)
  f_img = jax.random.normal(kf, (BATCH, PROMPT_DIM, 4, 4), jnp.float32)

  out = fsmamba_forward(x, f_img, const)
  out = jax.block_until_ready(out)
  assert out.shape == (BATCH, SEQ_LEN, D_MODEL)
  assert bool(jnp.all(jnp.isfinite(out)))
  print("KERNEL_OK")
</pallas_src>

<mosaic_0001>
module attributes {stable_mosaic.version = 11 : i64} {
  func.func @_fsmamba_kernel(%arg0: i32, %arg1: memref<32x8xf32, #tpu.memory_space<vmem>>, %arg2: memref<2x512xf32, #tpu.memory_space<vmem>>, %arg3: memref<1200x128xf32, #tpu.memory_space<vmem>>, %arg4: memref<32x8xf32, #tpu.memory_space<vmem>>) attributes {dimension_semantics = [#tpu.dimension_semantics<arbitrary>], iteration_bounds = array<i64: 1>, scalar_prefetch = 0 : i64, scratch_operands = 0 : i64, tpu.core_type = #tpu.core_type<tc>, window_params = [{pipeline_mode = #tpu.pipeline_mode<synchronous>, transform_indices = @transform_0, window_bounds = array<i64: 32, 8>}, {pipeline_mode = #tpu.pipeline_mode<synchronous>, transform_indices = @transform_1, window_bounds = array<i64: 2, 512>}, {pipeline_mode = #tpu.pipeline_mode<synchronous>, transform_indices = @transform_2, window_bounds = array<i64: 1200, 128>}, {pipeline_mode = #tpu.pipeline_mode<synchronous>, transform_indices = @transform_3, window_bounds = array<i64: 32, 8>}]} {
    %c0 = arith.constant 0 : index
    %c0_0 = arith.constant 0 : index
    %0 = vector.load %arg2[%c0, %c0_0] : memref<2x512xf32, #tpu.memory_space<vmem>>, vector<2x512xf32>
    %c0_1 = arith.constant 0 : index
    %c0_2 = arith.constant 0 : index
    %1 = vector.load %arg3[%c0_1, %c0_2] : memref<1200x128xf32, #tpu.memory_space<vmem>>, vector<512x16xf32>
    %cst = arith.constant dense<0.000000e+00> : vector<2x16xf32>
    %2 = tpu.matmul %0, %1, %cst {dimension_numbers = #tpu.dot_dimension_numbers<[1], [0], [0], [1], [0, 0, 1, 1], [], []>} : vector<2x512xf32>, vector<512x16xf32>, vector<2x16xf32> -> vector<2x16xf32>
    %c512 = arith.constant 512 : index
    %c0_3 = arith.constant 0 : index
    %3 = vector.load %arg3[%c512, %c0_3] : memref<1200x128xf32, #tpu.memory_space<vmem>>, vector<1x16xf32>
    %4 = vector.broadcast %3 : vector<1x16xf32> to vector<2x16xf32>
    %5 = arith.addf %2, %4 : vector<2x16xf32>
    %c0_4 = arith.constant 0 : index
    %c0_5 = arith.constant 0 : index
    %6 = vector.load %arg1[%c0_4, %c0_5] : memref<32x8xf32, #tpu.memory_space<vmem>>, vector<32x8xf32>
    %c520 = arith.constant 520 : index
    %c0_6 = arith.constant 0 : index
    %7 = vector.load %arg3[%c520, %c0_6] : memref<1200x128xf32, #tpu.memory_space<vmem>>, vector<8x16xf32>
    %cst_7 = arith.constant dense<0.000000e+00> : vector<32x16xf32>
    %8 = tpu.matmul %6, %7, %cst_7 {dimension_numbers = #tpu.dot_dimension_numbers<[1], [0], [0], [1], [0, 0, 1, 1], [], []>} : vector<32x8xf32>, vector<8x16xf32>, vector<32x16xf32> -> vector<32x16xf32>
    %c528 = arith.constant 528 : index
    %c0_8 = arith.constant 0 : index
    %9 = vector.load %arg3[%c528, %c0_8] : memref<1200x128xf32, #tpu.memory_space<vmem>>, vector<8x16xf32>
    %cst_9 = arith.constant dense<0.000000e+00> : vector<32x16xf32>
    %10 = tpu.matmul %6, %9, %cst_9 {dimension_numbers = #tpu.dot_dimension_numbers<[1], [0], [0], [1], [0, 0, 1, 1], [], []>} : vector<32x8xf32>, vector<8x16xf32>, vector<32x16xf32> -> vector<32x16xf32>
    %c536 = arith.constant 536 : index
    %c0_10 = arith.constant 0 : index
    %11 = vector.load %arg3[%c536, %c0_10] : memref<1200x128xf32, #tpu.memory_space<vmem>>, vector<128x32xf32>
    %cst_11 = arith.constant dense<0.000000e+00> : vector<128x16xf32>
    %12 = tpu.matmul %11, %8, %cst_11 {dimension_numbers = #tpu.dot_dimension_numbers<[1], [0], [0], [1], [0, 0, 1, 1], [], []>} : vector<128x32xf32>, vector<32x16xf32>, vector<128x16xf32> -> vector<128x16xf32>
    %c664 = arith.constant 664 : index
    %c0_12 = arith.constant 0 : index
    %13 = vector.load %arg3[%c664, %c0_12] : memref<1200x128xf32, #tpu.memory_space<vmem>>, vector<4x16xf32>
    %cst_13 = arith.constant 0.000000e+00 : f32
    %14 = vector.broadcast %cst_13 : f32 to vector<32x16xf32>
    %15 = vector.extract_strided_slice %13 {offsets = [0, 0], sizes = [1, 16], strides = [1, 1]} : vector<4x16xf32> to vector<1x16xf32>
    %16 = vector.extract_strided_slice %12 {offsets = [0, 0], sizes = [32, 16], strides = [1, 1]} : vector<128x16xf32> to vector<32x16xf32>
    %17 = vector.broadcast %15 : vector<1x16xf32> to vector<32x16xf32>
    %18 = arith.mulf %17, %16 : vector<32x16xf32>
    %19 = arith.addf %14, %18 : vector<32x16xf32>
    %20 = vector.extract_strided_slice %13 {offsets = [1, 0], sizes = [1, 16], strides = [1, 1]} : vector<4x16xf32> to vector<1x16xf32>
    %21 = vector.extract_strided_slice %12 {offsets = [32, 0], sizes = [32, 16], strides = [1, 1]} : vector<128x16xf32> to vector<32x16xf32>
    %22 = vector.broadcast %20 : vector<1x16xf32> to vector<32x16xf32>
    %23 = arith.mulf %22, %21 : vector<32x16xf32>
    %24 = arith.addf %19, %23 : vector<32x16xf32>
    %25 = vector.extract_strided_slice %13 {offsets = [2, 0], sizes = [1, 16], strides = [1, 1]} : vector<4x16xf32> to vector<1x16xf32>
    %26 = vector.extract_strided_slice %12 {offsets = [64, 0], sizes = [32, 16], strides = [1, 1]} : vector<128x16xf32> to vector<32x16xf32>
    %27 = vector.broadcast %25 : vector<1x16xf32> to vector<32x16xf32>
    %28 = arith.mulf %27, %26 : vector<32x16xf32>
    %29 = arith.addf %24, %28 : vector<32x16xf32>
    %30 = vector.extract_strided_slice %13 {offsets = [3, 0], sizes = [1, 16], strides = [1, 1]} : vector<4x16xf32> to vector<1x16xf32>
    %31 = vector.extract_strided_slice %12 {offsets = [96, 0], sizes = [32, 16], strides = [1, 1]} : vector<128x16xf32> to vector<32x16xf32>
    %32 = vector.broadcast %30 : vector<1x16xf32> to vector<32x16xf32>
    %33 = arith.mulf %32, %31 : vector<32x16xf32>
    %34 = arith.addf %29, %33 : vector<32x16xf32>
    %c672 = arith.constant 672 : index
    %c0_14 = arith.constant 0 : index
    %35 = vector.load %arg3[%c672, %c0_14] : memref<1200x128xf32, #tpu.memory_space<vmem>>, vector<1x16xf32>
    %36 = vector.broadcast %35 : vector<1x16xf32> to vector<32x16xf32>
    %37 = arith.addf %34, %36 : vector<32x16xf32>
    %cst_15 = arith.constant 0.000000e+00 : f32
    %38 = vector.broadcast %cst_15 : f32 to vector<32x16xf32>
    %39 = arith.subf %38, %37 : vector<32x16xf32>
    %40 = math.exp %39 : vector<32x16xf32>
    %cst_16 = arith.constant 1.000000e+00 : f32
    %41 = vector.broadcast %cst_16 : f32 to vector<32x16xf32>
    %42 = arith.addf %41, %40 : vector<32x16xf32>
    %43 = tpu.reciprocal %42 {approx = true} : vector<32x16xf32> -> vector<32x16xf32>
    %44 = arith.mulf %37, %43 : vector<32x16xf32>
    %c680 = arith.constant 680 : index
    %c0_17 = arith.constant 0 : index
    %45 = vector.load %arg3[%c680, %c0_17] : memref<1200x128xf32, #tpu.memory_space<vmem>>, vector<72x32xf32>
    %cst_18 = arith.constant dense<0.000000e+00> : vector<72x16xf32>
    %46 = tpu.matmul %45, %44, %cst_18 {dimension_numbers = #tpu.dot_dimension_numbers<[1], [0], [0], [1], [0, 0, 1, 1], [], []>} : vector<72x32xf32>, vector<32x16xf32>, vector<72x16xf32> -> vector<72x16xf32>
    %c752 = arith.constant 752 : index
    %c0_19 = arith.constant 0 : index
    %47 = vector.load %arg3[%c752, %c0_19] : memref<1200x128xf32, #tpu.memory_space<vmem>>, vector<72x2xf32>
    %cst_20 = arith.constant dense<0.000000e+00> : vector<72x16xf32>
    %48 = tpu.matmul %47, %5, %cst_20 {dimension_numbers = #tpu.dot_dimension_numbers<[1], [0], [0], [1], [0, 0, 1, 1], [], []>} : vector<72x2xf32>, vector<2x16xf32>, vector<72x16xf32> -> vector<72x16xf32>
    %49 = arith.addf %46, %48 : vector<72x16xf32>
    %c824 = arith.constant 824 : index
    %c0_21 = arith.constant 0 : index
    %50 = vector.load %arg3[%c824, %c0_21] : memref<1200x128xf32, #tpu.memory_space<vmem>>, vector<16x9xf32>
    %cst_22 = arith.constant dense<0.000000e+00> : vector<72x9xf32>
    %51 = tpu.matmul %49, %50, %cst_22 {dimension_numbers = #tpu.dot_dimension_numbers<[1], [0], [0], [1], [0, 0, 1, 1], [], []>} : vector<72x16xf32>, vector<16x9xf32>, vector<72x9xf32> -> vector<72x9xf32>
    %c840 = arith.constant 840 : index
    %c0_23 = arith.constant 0 : index
    %52 = vector.load %arg3[%c840, %c0_23] : memref<1200x128xf32, #tpu.memory_space<vmem>>, vector<9x16xf32>
    %cst_24 = arith.constant dense<0.000000e+00> : vector<72x16xf32>
    %53 = tpu.matmul %51, %52, %cst_24 {dimension_numbers = #tpu.dot_dimension_numbers<[1], [0], [0], [1], [0, 0, 1, 1], [], []>} : vector<72x9xf32>, vector<9x16xf32>, vector<72x16xf32> -> vector<72x16xf32>
    %c856 = arith.constant 856 : index
    %c0_25 = arith.constant 0 : index
    %54 = vector.load %arg3[%c856, %c0_25] : memref<1200x128xf32, #tpu.memory_space<vmem>>, vector<1x16xf32>
    %55 = vector.broadcast %54 : vector<1x16xf32> to vector<72x16xf32>
    %56 = arith.addf %53, %55 : vector<72x16xf32>
    %cst_26 = arith.constant 0.000000e+00 : f32
    %57 = vector.broadcast %cst_26 : f32 to vector<72x16xf32>
    %58 = arith.maximumf %56, %57 : vector<72x16xf32>
    %59 = math.absf %56 : vector<72x16xf32>
    %cst_27 = arith.constant 0.000000e+00 : f32
    %60 = vector.broadcast %cst_27 : f32 to vector<72x16xf32>
    %61 = arith.subf %60, %59 : vector<72x16xf32>
    %62 = math.exp %61 : vector<72x16xf32>
    %cst_28 = arith.constant 1.000000e+00 : f32
    %63 = vector.broadcast %cst_28 : f32 to vector<72x16xf32>
    %64 = arith.addf %63, %62 : vector<72x16xf32>
    %65 = math.log %64 : vector<72x16xf32>
    %66 = arith.addf %58, %65 : vector<72x16xf32>
    %67 = arith.mulf %66, %49 : vector<72x16xf32>
    %c928 = arith.constant 928 : index
    %c0_29 = arith.constant 0 : index
    %68 = vector.load %arg3[%c928, %c0_29] : memref<1200x128xf32, #tpu.memory_space<vmem>>, vector<1x16xf32>
    %69 = vector.broadcast %68 : vector<1x16xf32> to vector<72x16xf32>
    %70 = arith.mulf %69, %49 : vector<72x16xf32>
    %c864 = arith.constant 864 : index
    %c0_30 = arith.constant 0 : index
    %71 = vector.load %arg3[%c864, %c0_30] : memref<1200x128xf32, #tpu.memory_space<vmem>>, vector<16x64xf32>
    %cst_31 = arith.constant dense<0.000000e+00> : vector<72x64xf32>
    %72 = tpu.matmul %66, %71, %cst_31 {dimension_numbers = #tpu.dot_dimension_numbers<[1], [0], [0], [1], [0, 0, 1, 1], [], []>} : vector<72x16xf32>, vector<16x64xf32>, vector<72x64xf32> -> vector<72x64xf32>
    %c880 = arith.constant 880 : index
    %c0_32 = arith.constant 0 : index
    %73 = vector.load %arg3[%c880, %c0_32] : memref<1200x128xf32, #tpu.memory_space<vmem>>, vector<16x64xf32>
    %cst_33 = arith.constant dense<0.000000e+00> : vector<72x64xf32>
    %74 = tpu.matmul %67, %73, %cst_33 {dimension_numbers = #tpu.dot_dimension_numbers<[1], [0], [0], [1], [0, 0, 1, 1], [], []>} : vector<72x16xf32>, vector<16x64xf32>, vector<72x64xf32> -> vector<72x64xf32>
    %c896 = arith.constant 896 : index
    %c0_34 = arith.constant 0 : index
    %75 = vector.load %arg3[%c896, %c0_34] : memref<1200x128xf32, #tpu.memory_space<vmem>>, vector<9x64xf32>
    %cst_35 = arith.constant dense<0.000000e+00> : vector<72x64xf32>
    %76 = tpu.matmul %51, %75, %cst_35 {dimension_numbers = #tpu.dot_dimension_numbers<[1], [0], [0], [1], [0, 0, 1, 1], [], []>} : vector<72x9xf32>, vector<9x64xf32>, vector<72x64xf32> -> vector<72x64xf32>
    %77 = arith.mulf %74, %76 : vector<72x64xf32>
    %c912 = arith.constant 912 : index
    %c0_36 = arith.constant 0 : index
    %78 = vector.load %arg3[%c912, %c0_36] : memref<1200x128xf32, #tpu.memory_space<vmem>>, vector<9x64xf32>
    %cst_37 = arith.constant dense<0.000000e+00> : vector<72x64xf32>
    %79 = tpu.matmul %51, %78, %cst_37 {dimension_numbers = #tpu.dot_dimension_numbers<[1], [0], [0], [1], [0, 0, 1, 1], [], []>} : vector<72x9xf32>, vector<9x64xf32>, vector<72x64xf32> -> vector<72x64xf32>
    %c1016 = arith.constant 1016 : index
    %c0_38 = arith.constant 0 : index
    %80 = vector.load %arg3[%c1016, %c0_38] : memref<1200x128xf32, #tpu.memory_space<vmem>>, vector<72x72xf32>
    %cst_39 = arith.constant dense<0.000000e+00> : vector<72x64xf32>
    %81 = tpu.matmul %80, %72, %cst_39 {dimension_numbers = #tpu.dot_dimension_numbers<[1], [0], [0], [1], [0, 0, 1, 1], [], []>} : vector<72x72xf32>, vector<72x64xf32>, vector<72x64xf32> -> vector<72x64xf32>
    %82 = math.exp %81 : vector<72x64xf32>
    %cst_40 = arith.constant 0.000000e+00 : f32
    %83 = vector.broadcast %cst_40 : f32 to vector<72x64xf32>
    %84 = arith.subf %83, %81 : vector<72x64xf32>
    %85 = math.exp %84 : vector<72x64xf32>
    %86 = arith.mulf %85, %77 : vector<72x64xf32>
    %cst_41 = arith.constant dense<0.000000e+00> : vector<72x64xf32>
    %87 = tpu.matmul %80, %86, %cst_41 {dimension_numbers = #tpu.dot_dimension_numbers<[1], [0], [0], [1], [0, 0, 1, 1], [], []>} : vector<72x72xf32>, vector<72x64xf32>, vector<72x64xf32> -> vector<72x64xf32>
    %88 = arith.mulf %82, %87 : vector<72x64xf32>
    %89 = arith.mulf %79, %88 : vector<72x64xf32>
    %c952 = arith.constant 952 : index
    %c0_42 = arith.constant 0 : index
    %90 = vector.load %arg3[%c952, %c0_42] : memref<1200x128xf32, #tpu.memory_space<vmem>>, vector<64x16xf32>
    %cst_43 = arith.constant dense<0.000000e+00> : vector<72x16xf32>
    %91 = tpu.matmul %89, %90, %cst_43 {dimension_numbers = #tpu.dot_dimension_numbers<[1], [0], [0], [1], [0, 0, 1, 1], [], []>} : vector<72x64xf32>, vector<64x16xf32>, vector<72x16xf32> -> vector<72x16xf32>
    %92 = arith.addf %70, %91 : vector<72x16xf32>
    %cst_44 = arith.constant dense<0.000000e+00> : vector<72xf32>
    %93 = vector.multi_reduction <add>, %92, %cst_44 [1] : vector<72x16xf32> to vector<72xf32>
    %94 = vector.shape_cast %93 : vector<72xf32> to vector<72x1xf32>
    %cst_45 = arith.constant 1.600000e+01 : f32
    %95 = vector.broadcast %cst_45 : f32 to vector<72x1xf32>
    %96 = arith.divf %94, %95 : vector<72x1xf32>
    %97 = vector.broadcast %96 : vector<72x1xf32> to vector<72x16xf32>
    %98 = arith.subf %92, %97 : vector<72x16xf32>
    %99 = arith.mulf %98, %98 : vector<72x16xf32>
    %cst_46 = arith.constant dense<0.000000e+00> : vector<72xf32>
    %100 = vector.multi_reduction <add>, %99, %cst_46 [1] : vector<72x16xf32> to vector<72xf32>
    %101 = vector.shape_cast %100 : vector<72xf32> to vector<72x1xf32>
    %cst_47 = arith.constant 1.600000e+01 : f32
    %102 = vector.broadcast %cst_47 : f32 to vector<72x1xf32>
    %103 = arith.divf %101, %102 : vector<72x1xf32>
    %cst_48 = arith.constant 9.99999974E-6 : f32
    %104 = vector.broadcast %cst_48 : f32 to vector<72x1xf32>
    %105 = arith.addf %103, %104 : vector<72x1xf32>
    %106 = math.rsqrt %105 : vector<72x1xf32>
    %107 = vector.broadcast %106 : vector<72x1xf32> to vector<72x16xf32>
    %108 = arith.mulf %98, %107 : vector<72x16xf32>
    %c936 = arith.constant 936 : index
    %c0_49 = arith.constant 0 : index
    %109 = vector.load %arg3[%c936, %c0_49] : memref<1200x128xf32, #tpu.memory_space<vmem>>, vector<1x16xf32>
    %110 = vector.broadcast %109 : vector<1x16xf32> to vector<72x16xf32>
    %111 = arith.mulf %108, %110 : vector<72x16xf32>
    %c944 = arith.constant 944 : index
    %c0_50 = arith.constant 0 : index
    %112 = vector.load %arg3[%c944, %c0_50] : memref<1200x128xf32, #tpu.memory_space<vmem>>, vector<1x16xf32>
    %113 = vector.broadcast %112 : vector<1x16xf32> to vector<72x16xf32>
    %114 = arith.addf %111, %113 : vector<72x16xf32>
    %c1088 = arith.constant 1088 : index
    %c0_51 = arith.constant 0 : index
    %115 = vector.load %arg3[%c1088, %c0_51] : memref<1200x128xf32, #tpu.memory_space<vmem>>, vector<32x72xf32>
    %cst_52 = arith.constant dense<0.000000e+00> : vector<32x16xf32>
    %116 = tpu.matmul %115, %114, %cst_52 {dimension_numbers = #tpu.dot_dimension_numbers<[1], [0], [0], [1], [0, 0, 1, 1], [], []>} : vector<32x72xf32>, vector<72x16xf32>, vector<32x16xf32> -> vector<32x16xf32>
    %117 = arith.mulf %116, %10 : vector<32x16xf32>
    %c1120 = arith.constant 1120 : index
    %c0_53 = arith.constant 0 : index
    %118 = vector.load %arg3[%c1120, %c0_53] : memref<1200x128xf32, #tpu.memory_space<vmem>>, vector<32x2xf32>
    %cst_54 = arith.constant dense<0.000000e+00> : vector<32x16xf32>
    %119 = tpu.matmul %118, %5, %cst_54 {dimension_numbers = #tpu.dot_dimension_numbers<[1], [0], [0], [1], [0, 0, 1, 1], [], []>} : vector<32x2xf32>, vector<2x16xf32>, vector<32x16xf32> -> vector<32x16xf32>
    %c1152 = arith.constant 1152 : index
    %c0_55 = arith.constant 0 : index
    %120 = vector.load %arg3[%c1152, %c0_55] : memref<1200x128xf32, #tpu.memory_space<vmem>>, vector<32x16xf32>
    %121 = arith.mulf %119, %120 : vector<32x16xf32>
    %cst_56 = arith.constant dense<0.000000e+00> : vector<32xf32>
    %122 = vector.multi_reduction <add>, %121, %cst_56 [1] : vector<32x16xf32> to vector<32xf32>
    %123 = vector.shape_cast %122 : vector<32xf32> to vector<32x1xf32>
    %c1184 = arith.constant 1184 : index
    %c0_57 = arith.constant 0 : index
    %124 = vector.load %arg3[%c1184, %c0_57] : memref<1200x128xf32, #tpu.memory_space<vmem>>, vector<16x8xf32>
    %cst_58 = arith.constant dense<0.000000e+00> : vector<32x8xf32>
    %125 = tpu.matmul %117, %124, %cst_58 {dimension_numbers = #tpu.dot_dimension_numbers<[1], [0], [0], [1], [0, 0, 1, 1], [], []>} : vector<32x16xf32>, vector<16x8xf32>, vector<32x8xf32> -> vector<32x8xf32>
    %126 = vector.broadcast %123 : vector<32x1xf32> to vector<32x8xf32>
    %127 = arith.addf %125, %126 : vector<32x8xf32>
    %c0_59 = arith.constant 0 : index
    %c0_60 = arith.constant 0 : index
    %128 = vector.load %arg4[%c0_59, %c0_60] : memref<32x8xf32, #tpu.memory_space<vmem>>, vector<32x8xf32>
    tpu.vector_store %arg4[%c0_59, %c0_60], %127 {strides = array<i32>} : memref<32x8xf32, #tpu.memory_space<vmem>>, vector<32x8xf32>,
    return
  }
  func.func @transform_0(%arg0: i32) -> (i32, i32) {
    %c0_i32 = arith.constant 0 : i32
    %c0_i32_0 = arith.constant 0 : i32
    %c0_i32_1 = arith.constant 0 : i32
    return %c0_i32, %c0_i32_0 : i32, i32
  }
  func.func @transform_1(%arg0: i32) -> (i32, i32) {
    %c0_i32 = arith.constant 0 : i32
    %c0_i32_0 = arith.constant 0 : i32
    %c0_i32_1 = arith.constant 0 : i32
    return %c0_i32, %c0_i32_0 : i32, i32
  }
  func.func @transform_2(%arg0: i32) -> (i32, i32) {
    %c0_i32 = arith.constant 0 : i32
    %c0_i32_0 = arith.constant 0 : i32
    %c0_i32_1 = arith.constant 0 : i32
    return %c0_i32, %c0_i32_0 : i32, i32
  }
  func.func @transform_3(%arg0: i32) -> (i32, i32) {
    %c0_i32 = arith.constant 0 : i32
    %c0_i32_0 = arith.constant 0 : i32
    %c0_i32_1 = arith.constant 0 : i32
    return %c0_i32, %c0_i32_0 : i32, i32
  }
}

</mosaic_0001>

<bundles_post_ra>
// kernel: fsmamba_forward.1
= control target key start
LH: loop header
LB: loop body
LE: loop exit
PB: predicated region body
PF: predicated region fallthrough
CT: control target
= control target key end

     0   :  { %8 = vsyncpa [#allocation3], 0  ;;  %s4109_s12 = smov [#allocation2]   ;;  %s4927_s0 = inlined_call_operand.vmem [shape: f32[32,8], index: 0, kind: input, shape index: {}]   ;;  %s4928_s1 = inlined_call_operand.vmem [shape: f32[2,512], index: 1, kind: input, shape index: {}]   ;;  %s4929_s2 = inlined_call_operand.hbm [shape: f32[1200,128], index: 2, kind: input, shape index: {}]   ;;  %s4930_s3 = inlined_call_operand.vmem [shape: f32[32,8], index: 3, kind: output, shape index: {}]  }
   0x1   :  { %s18_s13 = sshll.u32 %s4109_s12, 4  ;;  %s4085_s16 = scalar_lea.hbm %s4929_s2, 19200  ;;  %s19_s13 = int_to_ptr.vmem [resolvable:$true] %s18_s13 }
   0x2   :  { %p4086_p0 = scmp.ne.s32.totalorder %s4929_s2, %s4085_s16  ;;  %p4089_p1 = scmp.lt.u32.totalorder %s4085_s16, %s4929_s2 }
   0x4   :  { %p4091_p2 = pnand %p4089_p1, %p4086_p0 }
   0x6   :  { %4094 = shalt.err (!%p4091_p2)
}
   0x7   :  { %s4095_s21 = scalar_lea.vmem %s19_s13, 19200  ;;  %p4100_p4 = scmp.lt.s32.totalorder %s19_s13, %s19_s13 }
   0x8   :  { %p4096_p3 = scmp.ne.s32.totalorder %s19_s13, %s4095_s21  ;;  %p4101_p5 = scmp.lt.s32.totalorder %s4095_s21, %s4095_s21 }
   0xa   :  { %p4102_p6 = por %p4101_p5, %p4100_p4 }
   0xc   :  { %p4103_p7 = pnand %p4102_p6, %p4096_p3 }
   0xe   :  { %4106 = shalt.err (!%p4103_p7)
}
   0xf   :  { %s4110_s22 = smov 128   ;;  %s4111_s23 = smov 8  }
  0x10   :  { %24 = dma.hbm_to_vmem [thread:$0]  %s4929_s2, 19200, %s19_s13, [#allocation3], %s4110_s22, %s4110_s22, %s4111_s23  }
  0x11   :  { %4107 = dma.done.wait [#allocation3], 19200  }
  0x12   :  { %4108 = vsyncadd [#allocation3], 4294948096  ;;  %v45_v0 = vld [vmem:[#allocation2 + $0x80] sm:$0xff]  ;;  %v46_v1 = vld [vmem:[#allocation2 + $0x88] sm:$0xff]  ;;  %v4112_v43 = vmov 1983009808   ;;  %v103_v45 = vlaneseq }
  0x13   :  { %v29_v2 = vld [vmem:[#allocation2] sm:$0xff]  ;;  %v3797_v3 = vpack.c.bf16 %v46_v1, %v45_v0  ;;  %v30_v4 = vld [vmem:[#allocation2 + $0x8] sm:$0xff]  ;;  %v47_v11 = vld [vmem:[#allocation2 + $0x90] sm:$0xff]  ;;  %v101_v44 = vunpack.c.l.s4 %v4112_v43  ;;  %vm265_vm0 = vcmask 64512   ;;  %vm465_vm1 = vcmask 261120  }
  0x14   :  { %v77_v5 = vld [vmem:[#allocation2 + $0x180] sm:$0xff]  ;;  %v78_v6 = vld [vmem:[#allocation2 + $0x188] sm:$0xff]  ;;  %v3799_v7 = vpack.c.bf16 %v30_v4, %v29_v2  ;;  %v48_v13 = vld [vmem:[#allocation2 + $0x98] sm:$0xff]  ;;  %v4149_v60 = vshrl.u32 %v103_v45, 7  ;;  %vm787_vm2 = vcmask 1041408   ;;  %vm4114_vm3 = vmmov 0  }
  0x15   :  { %v3829_v8 = vpack.c.bf16 %v78_v6, %v77_v5  ;;  %v61_v9 = vld [vmem:[#allocation2 + $0x100] sm:$0xff]  ;;  %v62_v10 = vld [vmem:[#allocation2 + $0x108] sm:$0xff]  ;;  %3798 = vmatprep.subr.bf16.mxu0 %v3797_v3  ;;  %v31_v14 = vld [vmem:[#allocation2 + $0x10] sm:$0xff]  ;;  %v3801_v16 = vpack.c.bf16 %v48_v13, %v47_v11  ;;  %v102_v59 = vunpack.c.0.s8 %v101_v44  ;;  %vm759_vm4 = vcmask 15360  }
  0x16   :  { %v3831_v12 = vpack.c.bf16 %v62_v10, %v61_v9  ;;  %v32_v15 = vld [vmem:[#allocation2 + $0x18] sm:$0xff]  ;;  %3800 = vmatpush3.bf16.msra.mxu0 %v3799_v7  ;;  %v79_v18 = vld [vmem:[#allocation2 + $0x190] sm:$0xff]  ;;  %v49_v23 = vld [vmem:[#allocation2 + $0xa0] sm:$0xff]  ;;  %vm1213_vm5 = vcmask 1040384   ;;  %vm1040_vm6 = vcmask 130048   ;;  %vm4116_vm7 = vmmov 1  }
  0x17   :  { %3830 = vmatprep.subr.bf16.mxu1 %v3829_v8  ;;  %v3803_v17 = vpack.c.bf16 %v32_v15, %v31_v14  ;;  %v80_v19 = vld [vmem:[#allocation2 + $0x198] sm:$0xff]  ;;  %v63_v20 = vld [vmem:[#allocation2 + $0x110] sm:$0xff]  ;;  %v50_v24 = vld [vmem:[#allocation2 + $0xa8] sm:$0xff]  ;;  %3802 = vmatprep.subr.bf16.mxu0 %v3801_v16  ;;  %v105_v10 = vsub.s32 %v102_v59, %v4149_v60  ;;  %vm1185_vm9 = vcmask 72704   ;;  %vm1957_vm10 = vcmask 588800  }
  0x18   :  { %3832 = vmatpush3.bf16.msra.mxu1 %v3831_v12  ;;  %v3833_v21 = vpack.c.bf16 %v80_v19, %v79_v18  ;;  %v64_v22 = vld [vmem:[#allocation2 + $0x118] sm:$0xff]  ;;  %v3805_v26 = vpack.c.bf16 %v50_v24, %v49_v23  ;;  %v33_v27 = vld [vmem:[#allocation2 + $0x20] sm:$0xff]  ;;  %v34_v28 = vld [vmem:[#allocation2 + $0x28] sm:$0xff]  ;;  %vm2285_vm11 = vcmask 523264  }
  0x19   :  { %v3835_v25 = vpack.c.bf16 %v64_v22, %v63_v20  ;;  %v81_v29 = vld [vmem:[#allocation2 + $0x1a0] sm:$0xff]  ;;  %v82_v30 = vld [vmem:[#allocation2 + $0x1a8] sm:$0xff]  ;;  %v3807_v33 = vpack.c.bf16 %v34_v28, %v33_v27  ;;  %v51_v35 = vld [vmem:[#allocation2 + $0xb0] sm:$0xff] }
  0x1a   :  { %3834 = vmatprep.subr.bf16.mxu1 %v3833_v21  ;;  %v65_v31 = vld [vmem:[#allocation2 + $0x120] sm:$0xff]  ;;  %v66_v32 = vld [vmem:[#allocation2 + $0x128] sm:$0xff]  ;;  %3804 = vmatpush3.bf16.msra.mxu0 %v3803_v17  ;;  %v3837_v34 = vpack.c.bf16 %v82_v30, %v81_v29  ;;  %v52_v36 = vld [vmem:[#allocation2 + $0xb8] sm:$0xff] }
  0x1b   :  { %v35_v37 = vld [vmem:[#allocation2 + $0x30] sm:$0xff]  ;;  %3806 = vmatprep.subr.bf16.mxu0 %v3805_v26  ;;  %v3839_v38 = vpack.c.bf16 %v66_v32, %v65_v31  ;;  %v3809_v39 = vpack.c.bf16 %v52_v36, %v51_v35  ;;  %v36_v40 = vld [vmem:[#allocation2 + $0x38] sm:$0xff]  ;;  %v53_v49 = vld [vmem:[#allocation2 + $0xc0] sm:$0xff] }
  0x1c   :  { %3836 = vmatpush3.bf16.msra.mxu1 %v3835_v25  ;;  %v83_v41 = vld [vmem:[#allocation2 + $0x1b0] sm:$0xff]  ;;  %v84_v42 = vld [vmem:[#allocation2 + $0x1b8] sm:$0xff]  ;;  %v54_v50 = vld [vmem:[#allocation2 + $0xc8] sm:$0xff]  ;;  %v3811_v51 = vpack.c.bf16 %v36_v40, %v35_v37 }
  0x1d   :  { %3838 = vmatprep.subr.bf16.mxu1 %v3837_v34  ;;  %v3841_v46 = vpack.c.bf16 %v84_v42, %v83_v41  ;;  %v67_v47 = vld [vmem:[#allocation2 + $0x130] sm:$0xff]  ;;  %v68_v48 = vld [vmem:[#allocation2 + $0x138] sm:$0xff]  ;;  %v85_v52 = vld [vmem:[#allocation2 + $0x1c0] sm:$0xff]  ;;  %v3813_v55 = vpack.c.bf16 %v54_v50, %v53_v49  ;;  %v4113_v50 = vmov 0.0  }
  0x1e   :  { %3808 = vmatpush3.bf16.msra.mxu0 %v3807_v33  ;;  %v86_v53 = vld [vmem:[#allocation2 + $0x1c8] sm:$0xff]  ;;  %v3843_v54 = vpack.c.bf16 %v68_v48, %v67_v47  ;;  %v37_v56 = vld [vmem:[#allocation2 + $0x40] sm:$0xff]  ;;  %v55_v63 = vld [vmem:[#allocation2 + $0xd0] sm:$0xff] }
  0x1f   :  { %3810 = vmatprep.subr.bf16.mxu0 %v3809_v39  ;;  %v38_v57 = vld [vmem:[#allocation2 + $0x48] sm:$0xff]  ;;  %v69_v58 = vld [vmem:[#allocation2 + $0x140] sm:$0xff]  ;;  %v3845_v61 = vpack.c.bf16 %v86_v53, %v85_v52  ;;  %v56_v0 = vld [vmem:[#allocation2 + $0xd8] sm:$0xff] }
  0x20   :  { %3840 = vmatpush3.bf16.msra.mxu1 %v3839_v38  ;;  %v70_v62 = vld [vmem:[#allocation2 + $0x148] sm:$0xff]  ;;  %v87_v1 = vld [vmem:[#allocation2 + $0x1d0] sm:$0xff]  ;;  %v88_v2 = vld [vmem:[#allocation2 + $0x1d8] sm:$0xff]  ;;  %v3815_v3 = vpack.c.bf16 %v38_v57, %v37_v56  ;;  %v3817_v6 = vpack.c.bf16 %v56_v0, %v55_v63 }
  0x21   :  { %3842 = vmatprep.subr.bf16.mxu1 %v3841_v46  ;;  %v39_v4 = vld [vmem:[#allocation2 + $0x50] sm:$0xff]  ;;  %v3847_v5 = vpack.c.bf16 %v70_v62, %v69_v58  ;;  %v40_v7 = vld [vmem:[#allocation2 + $0x58] sm:$0xff]  ;;  %v3849_v11 = vpack.c.bf16 %v88_v2, %v87_v1  ;;  %v57_v12 = vld [vmem:[#allocation2 + $0xe0] sm:$0xff] }
  0x22   :  { %3812 = vmatpush3.bf16.msra.mxu0 %v3811_v51  ;;  %v71_v8 = vld [vmem:[#allocation2 + $0x150] sm:$0xff]  ;;  %v72_v9 = vld [vmem:[#allocation2 + $0x158] sm:$0xff]  ;;  %v58_v13 = vld [vmem:[#allocation2 + $0xe8] sm:$0xff]  ;;  %v3819_v16 = vpack.c.bf16 %v40_v7, %v39_v4 }
  0x23   :  { %3814 = vmatprep.subr.bf16.mxu0 %v3813_v55  ;;  %v89_v14 = vld [vmem:[#allocation2 + $0x1e0] sm:$0xff]  ;;  %v90_v15 = vld [vmem:[#allocation2 + $0x1e8] sm:$0xff]  ;;  %v3851_v17 = vpack.c.bf16 %v72_v9, %v71_v8  ;;  %v3821_v19 = vpack.c.bf16 %v58_v13, %v57_v12  ;;  %v59_v27 = vld [vmem:[#allocation2 + $0xf0] sm:$0xff] }
  0x24   :  { %3844 = vmatpush3.bf16.msra.mxu1 %v3843_v54  ;;  %v28_v18 = vld [vmem:[%s4928_s1] sm:$0xff]  ;;  %v42_v21 = vld [vmem:[#allocation2 + $0x68] sm:$0xff]  ;;  %v3853_v25 = vpack.c.bf16 %v90_v15, %v89_v14  ;;  %v60_v28 = vld [vmem:[#allocation2 + $0xf8] sm:$0xff] }
  0x25   :  { %3846 = vmatprep.subr.bf16.mxu1 %v3845_v61  ;;  %v41_v20 = vld [vmem:[#allocation2 + $0x60] sm:$0xff]  ;;  %v106_v23 = vrot.slane %v28_v18, %v105_v10  ;;  %v99_v24 = vcombine.high %v28_v18, %v28_v18  ;;  %v74_v26 = vld [vmem:[#allocation2 + $0x168] sm:$0xff]  ;;  %v91_v29 = vld [vmem:[#allocation2 + $0x1f0] sm:$0xff]  ;;  %v3825_v35 = vpack.c.bf16 %v60_v28, %v59_v27  ;;  %v4115_v27 = vmov 0.0|0.0  }
  0x26   :  { %3816 = vmatpush3.bf16.msra.mxu0 %v3815_v3  ;;  %v73_v22 = vld [vmem:[#allocation2 + $0x160] sm:$0xff]  ;;  %v92_v30 = vld [vmem:[#allocation2 + $0x1f8] sm:$0xff]  ;;  %v3823_v33 = vpack.c.bf16 %v42_v21, %v41_v20  ;;  %v43_v36 = vld [vmem:[#allocation2 + $0x70] sm:$0xff] }
  0x27   :  { %3818 = vmatprep.subr.bf16.mxu0 %v3817_v6  ;;  %v114_v31 = vcombine.high %v106_v23, %v106_v23  ;;  %v113_v32 = vrot.slane %v99_v24, %v105_v10  ;;  %v3855_v34 = vpack.c.bf16 %v74_v26, %v73_v22  ;;  %v44_v37 = vld [vmem:[#allocation2 + $0x78] sm:$0xff]  ;;  %v3857_v39 = vpack.c.bf16 %v92_v30, %v91_v29  ;;  %v75_v40 = vld [vmem:[#allocation2 + $0x170] sm:$0xff]  ;;  %v264_v44 = vld [vmem:[#allocation2 + $0x208] sm:$0xff] }
  0x28   :  { %3848 = vmatpush3.bf16.msra.mxu1 %v3847_v5  ;;  %v76_v41 = vld [vmem:[#allocation2 + $0x178] sm:$0xff]  ;;  %v3827_v42 = vpack.c.bf16 %v44_v37, %v43_v36  ;;  %v260_v45 = vld [vmem:[%s4927_s0] sm:$0xff]  ;;  %v261_v46 = vld [vmem:[%s4927_s0 + $0x8] sm:$0xff]  ;;  %v662_v37 = vsub.s32 0, %v4149_v60 }
  0x29   :  { %3850 = vmatprep.subr.bf16.mxu1 %v3849_v11  ;;  %v115_v38 = vcombine.high %v113_v32, %v113_v32  ;;  %184 = vmatprep.mubr.f32.mxu0 %v114_v31  ;;  %v3859_v43 = vpack.c.bf16 %v76_v41, %v75_v40  ;;  %v262_v47 = vld [vmem:[%s4927_s0 + $0x10] sm:$0xff]  ;;  %v263_v48 = vld [vmem:[%s4927_s0 + $0x18] sm:$0xff]  ;;  %v2912_v53 = vld [vmem:[#allocation2 + $0x200] ss:$0 sm:$0xff] }
  0x2a   :  { %3820 = vmatpush3.bf16.msra.mxu0 %v3819_v16  ;;  %v363_v49 = vld [vmem:[#allocation2 + $0x210] sm:$0xff]  ;;  %v449_v51 = vld [vmem:[#allocation2 + $0x218] sm:$0xff]  ;;  %v450_v4 = vld [vmem:[#allocation2 + $0x220] sm:$0xff] }
  0x2b   :  { %3822 = vmatprep.subr.bf16.mxu0 %v3821_v19  ;;  %254 = vmatprep.mubr.f32.mxu1 %v115_v38  ;;  %v451_v5 = vld [vmem:[#allocation2 + $0x228] sm:$0xff]  ;;  %v452_v6 = vld [vmem:[#allocation2 + $0x230] sm:$0xff]  ;;  %v453_v7 = vld [vmem:[#allocation2 + $0x238] sm:$0xff] }
  0x2c   :  { %3852 = vmatpush3.bf16.msra.mxu1 %v3851_v17  ;;  %v454_v8 = vld [vmem:[#allocation2 + $0x240] sm:$0xff]  ;;  %v455_v9 = vld [vmem:[#allocation2 + $0x248] sm:$0xff]  ;;  %v456_v10 = vld [vmem:[#allocation2 + $0x250] sm:$0xff] }
  0x2d   :  { %3854 = vmatprep.subr.bf16.mxu1 %v3853_v25  ;;  %v457_v11 = vld [vmem:[#allocation2 + $0x258] sm:$0xff]  ;;  %v458_v12 = vld [vmem:[#allocation2 + $0x260] sm:$0xff]  ;;  %v459_v13 = vld [vmem:[#allocation2 + $0x268] sm:$0xff] }
  0x2e   :  { %3824 = vmatpush3.bf16.msra.mxu0 %v3823_v33  ;;  %v460_v14 = vld [vmem:[#allocation2 + $0x270] sm:$0xff]  ;;  %v461_v15 = vld [vmem:[#allocation2 + $0x278] sm:$0xff]  ;;  %v462_v16 = vld [vmem:[#allocation2 + $0x280] sm:$0xff] }
  0x2f   :  { %3826 = vmatprep.subr.bf16.mxu0 %v3825_v35  ;;  %v463_v17 = vld [vmem:[#allocation2 + $0x288] sm:$0xff]  ;;  %v464_v18 = vld [vmem:[#allocation2 + $0x290] sm:$0xff]  ;;  %v751_v20 = vld [vmem:[#allocation2 + $0x2f8] sm:$0xff] }
  0x30   :  { %3856 = vmatpush3.bf16.msra.mxu1 %v3855_v34  ;;  %v750_v19 = vld [vmem:[#allocation2 + $0x2f0] sm:$0xff]  ;;  %v752_v21 = vld [vmem:[#allocation2 + $0x300] sm:$0xff]  ;;  %v753_v22 = vld [vmem:[#allocation2 + $0x308] sm:$0xff] }
  0x31   :  { %3858 = vmatprep.subr.bf16.mxu1 %v3857_v39  ;;  %v755_v24 = vld [vmem:[#allocation2 + $0x318] sm:$0xff]  ;;  %v756_v25 = vld [vmem:[#allocation2 + $0x320] sm:$0xff]  ;;  %v757_v26 = vld [vmem:[#allocation2 + $0x328] sm:$0xff]  ;;  %v674_v39 = vsub.s32 1, %v4149_v60 }
  0x32   :  { %3828 = vmatpush3.bf16.msra.mxu0 %v3827_v42  ;;  %v758_v28 = vld [vmem:[#allocation2 + $0x330] sm:$0xff]  ;;  %v1038_v30 = vld [vmem:[#allocation2 + $0x338] sm:$0xff]  ;;  %v1039_v31 = vld [vmem:[#allocation2 + $0x340] sm:$0xff] }
  0x33   :  { %3324 = vmatprep.subr.mxu0 %v264_v44  ;;  %v3876_v33 = vpack.c.bf16 %v1039_v31, %v1038_v30  ;;  %v659_v40 = vld [vmem:[#allocation2 + $0x298] sm:$0xf]  ;;  %vm4271_vm8 = vmpackc.low %vm1213_vm5, %vm4116_vm7 }
  0x34   :  { %3860 = vmatpush3.bf16.msra.mxu1 %v3859_v43  ;;  %v663_v42 = vrot.slane %v659_v40, %v662_v37 }
  0x35   :  { %185 = vmatmul.mubr.f32.vlgmr.msra.gmra.mrb[0].mxu0 %v106_v23  ;;  %3332 = vmatprep.subr.mxu1 %v363_v49  ;;  %v754_v23 = vld [vmem:[#allocation2 + $0x310] sm:$0xff] }
  0x36   :  { %3325 = vmatpush3.msra.mxu0 %v264_v44  ;;  %3326 = vmatprep.mubr.msk.f32.mxu0 %vm265_vm0, %v260_v45  ;;  %v675_v44 = vrot.slane %v659_v40, %v674_v39 }
  0x37   :  { %255 = vmatmul.mubr.f32.vlgmr.msra.gmra.mrb[0].mxu1 %v113_v32 }
  0x38   :  { %3334 = vmatprep.mubr.msk.f32.mxu1 %vm265_vm0, %v260_v45  ;;  %3333 = vmatpush3.msra.mxu1 %v363_v49  ;;  %v686_v49 = vsub.s32 2, %v4149_v60 }
  0x39   :  { %3327 = vmatmul.mubr.msk.f32.vlgmr.msra.gmra.mrb[2].mxu0 %vm265_vm0, %v261_v46  ;;  %3372 = vmatprep.subr.mxu1 %v4113_v50 }
  0x3a   :  { %3329 = vmatprep.mubr.msk.f32.mxu0 %vm265_vm0, %v262_v47 }
  0x3b   :  { %3335 = vmatmul.mubr.msk.f32.vlgmr.msra.gmra.mrb[2].mxu1 %vm265_vm0, %v261_v46 }
  0x3c   :  { %3337 = vmatprep.mubr.msk.f32.mxu1 %vm265_vm0, %v262_v47 }
  0x3d   :  { %3330 = vmatmul.mubr.msk.f32.gmra.mrb[4].mxu0 %vm265_vm0, %v263_v48 }
  0x3e   :  { %3348 = vmatprep.mubr.msk.f32.mxu0 %vm465_vm1, %v449_v51 }
  0x3f   :  { %3338 = vmatmul.mubr.msk.f32.gmra.mrb[4].mxu1 %vm265_vm0, %v263_v48 }
  0x40   :  { %3374 = vmatprep.mubr.msk.f32.mxu1 %vm4114_vm3, %v4113_v50 }
 0x108   :  { %v3090_v52 = vpop.f32.mrb[0].mxu0 }
 0x109   :  { %v3091_v54 = vpop.f32.mrb[1].mxu0 }
 0x10a   :  { %v3125_v55 = vpop.f32.mrb[0].mxu1  ;;  %v3092_v56 = vadd.f32 %v3091_v54, %v3090_v52 }
 0x10b   :  { %v3126_v57 = vpop.f32.mrb[1].mxu1 }
 0x10c   :  { %v3127_v58 = vadd.f32 %v3126_v57, %v3125_v55  ;;  %v187_v59 = vadd.f32 %v3092_v56, %v2912_v53  ;;  %v3328_v61 = vpop.f32.mrb[2].mxu0 }
 0x10d   :  { %v344_v62 = vpop.f32.mrb[3].mxu0 }
 0x10e   :  { %v4177_v63 = vadd.f32 %v3127_v58, %v187_v59  ;;  %v3861_v0 = vpack.c.bf16 %v3328_v61, %v344_v62  ;;  %v4229_v29 = vpop.f32.mrb[2].mxu1  ;;  %v687_v59 = vrot.slane %v659_v40, %v686_v49 }
 0x10f   :  { %v4231_v32 = vpop.f32.mrb[3].mxu1 }
 0x110   :  { %v3331_v1 = vpop.f32.mrb[4].mxu0  ;;  %3862 = vmatprep.subr.bf16.mxu0 %v3861_v0  ;;  %3373 = vmatpush3.msk.msra.mxu1 %vm787_vm2, %v4177_v63 }
 0x111   :  { %v354_v2 = vpop.f32.mrb[5].mxu0  ;;  %3864 = vmatpush3.bf16.msra.mxu0 %v3861_v0  ;;  %3375 = vmatmul.mubr.msk.f32.vlgmr.msra.gmra.mrb[6].mxu1 %vm759_vm4, %v750_v19  ;;  %v2937_v19 = vld [vmem:[#allocation2 + $0x2a0] ss:$0 sm:$0xff] }
 0x112   :  { %v3865_v3 = vpack.c.bf16 %v3331_v1, %v354_v2  ;;  %3377 = vmatprep.mubr.msk.f32.mxu1 %vm4114_vm3, %v4113_v50  ;;  %3869 = vmatprep.subr.bf16.mxu1 %v4115_v27  ;;  %v4233_v34 = vpop.f32.mrb[4].mxu1 }
 0x113   :  { %v4235_v35 = vpop.f32.mrb[5].mxu1 }
 0x114   :  { %3866 = vmatprep.subr.bf16.mxu0 %v3865_v3 }
 0x115   :  { %3868 = vmatpush3.bf16.msra.mxu0 %v3865_v3  ;;  %3378 = vmatmul.mubr.msk.f32.gmra.mrb[8].mxu1 %vm759_vm4, %v751_v20 }
 0x116   :  { %3380 = vmatprep.mubr.msk.f32.mxu1 %vm4114_vm3, %v4113_v50  ;;  %3875 = vmatprep.subr.bf16.mxu0 %v4115_v27 }
 0x118   :  { %3349 = vmatmul.mubr.msk.f32.vlgmr.msra.gmra.mrb[6].mxu0 %vm465_vm1, %v450_v4 }
 0x119   :  { %3351 = vmatprep.mubr.msk.f32.mxu0 %vm465_vm1, %v451_v5  ;;  %3381 = vmatmul.mubr.msk.f32.gmra.mrb[10].mxu1 %vm759_vm4, %v752_v21  ;;  %v698_v5 = vsub.s32 3, %v4149_v60 }
 0x11a   :  { %3383 = vmatprep.mubr.msk.f32.mxu1 %vm4114_vm3, %v4113_v50  ;;  %3877 = vmatpush3.bf16.msra.mxu0 %v3876_v33 }
 0x11b   :  { %3878 = vmatprep.subr.bf16.mxu0 %v4115_v27 }
 0x11c   :  { %3352 = vmatmul.mubr.msk.f32.gmra.mrb[8].mxu0 %vm465_vm1, %v452_v6 }
 0x11d   :  { %3354 = vmatprep.mubr.msk.f32.mxu0 %vm465_vm1, %v453_v7  ;;  %3384 = vmatmul.mubr.msk.f32.gmra.mrb[12].mxu1 %vm759_vm4, %v753_v22 }
 0x11e   :  { %3386 = vmatprep.mubr.msk.f32.mxu1 %vm4114_vm3, %v4113_v50 }
 0x120   :  { %3355 = vmatmul.mubr.msk.f32.gmra.mrb[10].mxu0 %vm465_vm1, %v454_v8 }
 0x121   :  { %3357 = vmatprep.mubr.msk.f32.mxu0 %vm465_vm1, %v455_v9  ;;  %3387 = vmatmul.mubr.msk.f32.gmra.mrb[14].mxu1 %vm759_vm4, %v754_v23 }
 0x122   :  { %3389 = vmatprep.mubr.msk.f32.mxu1 %vm4114_vm3, %v4113_v50 }
 0x124   :  { %3358 = vmatmul.mubr.msk.f32.gmra.mrb[12].mxu0 %vm465_vm1, %v456_v10 }
 0x125   :  { %3360 = vmatprep.mubr.msk.f32.mxu0 %vm465_vm1, %v457_v11  ;;  %3390 = vmatmul.mubr.msk.f32.gmra.mrb[16].mxu1 %vm759_vm4, %v755_v24 }
 0x126   :  { %3392 = vmatprep.mubr.msk.f32.mxu1 %vm4114_vm3, %v4113_v50 }
 0x128   :  { %3361 = vmatmul.mubr.msk.f32.gmra.mrb[14].mxu0 %vm465_vm1, %v458_v12  ;;  %v699_v12 = vrot.slane %v659_v40, %v698_v5  ;;  %v744_v5 = vld [vmem:[#allocation2 + $0x2c0] sm:$0xff] }
 0x129   :  { %3363 = vmatprep.mubr.msk.f32.mxu0 %vm465_vm1, %v459_v13  ;;  %3393 = vmatmul.mubr.msk.f32.gmra.mrb[18].mxu1 %vm759_vm4, %v756_v25 }
 0x12a   :  { %3395 = vmatprep.mubr.msk.f32.mxu1 %vm4114_vm3, %v4113_v50 }
 0x12c   :  { %3364 = vmatmul.mubr.msk.f32.gmra.mrb[16].mxu0 %vm465_vm1, %v460_v14 }
 0x12d   :  { %3366 = vmatprep.mubr.msk.f32.mxu0 %vm465_vm1, %v461_v15  ;;  %3396 = vmatmul.mubr.msk.f32.gmra.mrb[20].mxu1 %vm759_vm4, %v757_v26 }
 0x12e   :  { %3398 = vmatprep.mubr.msk.f32.mxu1 %vm4114_vm3, %v4113_v50 }
 0x130   :  { %3367 = vmatmul.mubr.msk.f32.gmra.mrb[18].mxu0 %vm465_vm1, %v462_v16 }
 0x131   :  { %3369 = vmatprep.mubr.msk.f32.mxu0 %vm465_vm1, %v463_v17  ;;  %3399 = vmatmul.mubr.msk.f32.gmra.mrb[22].mxu1 %vm759_vm4, %v758_v28 }
 0x132   :  { %3409 = vmatprep.mubr.msk.f32.mxu1 %vm4114_vm3, %v4113_v50 }
 0x134   :  { %3370 = vmatmul.mubr.msk.f32.gmra.mrb[20].mxu0 %vm465_vm1, %v464_v18 }
 0x135   :  { %3440 = vmatprep.mubr.msk.f32.mxu0 %vm4114_vm3, %v4113_v50 }
 0x1eb   :  { %v3350_v36 = vpop.f32.mrb[6].mxu0 }
 0x1ec   :  { %v580_v38 = vpop.f32.mrb[7].mxu0  ;;  %v665_v46 = vmul.f32 %v3350_v36, %v663_v42 }
 0x1ed   :  { %v664_v51 = vmul.f32 %v663_v42, %v580_v38 }
 0x1ef   :  { %v3353_v41 = vpop.f32.mrb[8].mxu0 }
 0x1f0   :  { %v590_v43 = vpop.f32.mrb[9].mxu0  ;;  %v667_v56 = vmul.f32 %v3353_v41, %v663_v42 }
 0x1f1   :  { %v666_v61 = vmul.f32 %v663_v42, %v590_v43 }
 0x1f3   :  { %v3356_v45 = vpop.f32.mrb[10].mxu0 }
 0x1f4   :  { %v677_v47 = vmul.f32 %v3356_v45, %v675_v44  ;;  %v600_v48 = vpop.f32.mrb[11].mxu0 }
 0x1f5   :  { %v676_v52 = vmul.f32 %v675_v44, %v600_v48 }
 0x1f6   :  { %v681_v53 = vadd.f32 %v677_v47, %v665_v46 }
 0x1f7   :  { %v680_v54 = vadd.f32 %v676_v52, %v664_v51  ;;  %v3359_v55 = vpop.f32.mrb[12].mxu0 }
 0x1f8   :  { %v679_v57 = vmul.f32 %v3359_v55, %v675_v44  ;;  %v610_v58 = vpop.f32.mrb[13].mxu0 }
 0x1f9   :  { %v678_v62 = vmul.f32 %v675_v44, %v610_v58 }
 0x1fa   :  { %v683_v0 = vadd.f32 %v679_v57, %v667_v56 }
 0x1fb   :  { %v682_v1 = vadd.f32 %v678_v62, %v666_v61  ;;  %v3362_v2 = vpop.f32.mrb[14].mxu0 }
 0x1fc   :  { %v689_v3 = vmul.f32 %v3362_v2, %v687_v59  ;;  %v620_v4 = vpop.f32.mrb[15].mxu0  ;;  %v741_v2 = vld [vmem:[#allocation2 + $0x2a8] sm:$0xff] }
 0x1fd   :  { %v688_v6 = vmul.f32 %v687_v59, %v620_v4  ;;  %v743_v4 = vld [vmem:[#allocation2 + $0x2b8] sm:$0xff] }
 0x1fe   :  { %v693_v7 = vadd.f32 %v689_v3, %v681_v53  ;;  %v742_v3 = vld [vmem:[#allocation2 + $0x2b0] sm:$0xff] }
 0x1ff   :  { %v692_v8 = vadd.f32 %v688_v6, %v680_v54  ;;  %v3365_v9 = vpop.f32.mrb[16].mxu0  ;;  %v745_v6 = vld [vmem:[#allocation2 + $0x2c8] sm:$0xff] }
 0x200   :  { %v691_v10 = vmul.f32 %v3365_v9, %v687_v59  ;;  %v630_v11 = vpop.f32.mrb[17].mxu0  ;;  %v748_v9 = vld [vmem:[#allocation2 + $0x2e0] sm:$0xff] }
 0x201   :  { %v690_v13 = vmul.f32 %v687_v59, %v630_v11  ;;  %v1178_v11 = vld [vmem:[#allocation2 + $0x348] sm:$0xff] }
 0x202   :  { %v695_v14 = vadd.f32 %v691_v10, %v683_v0  ;;  %v749_v10 = vld [vmem:[#allocation2 + $0x2e8] sm:$0xff] }
 0x203   :  { %v694_v15 = vadd.f32 %v690_v13, %v682_v1  ;;  %v3368_v16 = vpop.f32.mrb[18].mxu0 }
 0x204   :  { %v701_v17 = vmul.f32 %v3368_v16, %v699_v12  ;;  %v640_v18 = vpop.f32.mrb[19].mxu0 }
 0x205   :  { %v700_v20 = vmul.f32 %v699_v12, %v640_v18 }
 0x206   :  { %v705_v21 = vadd.f32 %v701_v17, %v693_v7  ;;  %v746_v7 = vld [vmem:[#allocation2 + $0x2d0] sm:$0xff] }
 0x207   :  { %v704_v22 = vadd.f32 %v700_v20, %v692_v8  ;;  %v3371_v23 = vpop.f32.mrb[20].mxu0  ;;  %v747_v8 = vld [vmem:[#allocation2 + $0x2d8] sm:$0xff] }
 0x208   :  { %v714_v24 = vadd.f32 %v2937_v19, %v705_v21  ;;  %v703_v60 = vmul.f32 %v3371_v23, %v699_v12  ;;  %v650_v25 = vpop.f32.mrb[21].mxu0 }
 0x209   :  { %v713_v26 = vadd.f32 %v2937_v19, %v704_v22  ;;  %v702_v28 = vmul.f32 %v699_v12, %v650_v25  ;;  %v1179_v12 = vld [vmem:[#allocation2 + $0x350] sm:$0x1] }
 0x20a   :  { %v718_v30 = vsub.f32 0.0, %v714_v24  ;;  %v707_v31 = vadd.f32 %v703_v60, %v695_v14  ;;  %v3879_v13 = vpack.c.bf16 %v1179_v12, %v1178_v11 }
 0x20b   :  { %v717_v33 = vsub.f32 0.0, %v713_v26  ;;  %v706_v36 = vadd.f32 %v702_v28, %v694_v15 }
 0x20c   :  { %v723_v37 = vmul.f32 1.442695, %v718_v30  ;;  %v716_v38 = vadd.f32 %v2937_v19, %v707_v31 }
 0x20d   :  { %v721_v39 = vmul.f32 1.442695, %v717_v33  ;;  %v715_v40 = vadd.f32 %v2937_v19, %v706_v36 }
 0x20e   :  { %3979 = vpow2.f32 %v723_v37  ;;  %v720_v41 = vsub.f32 0.0, %v716_v38 }
 0x20f   :  { %3981 = vpow2.f32 %v721_v39  ;;  %v719_v42 = vsub.f32 0.0, %v715_v40 }
 0x210   :  { %v727_v43 = vmul.f32 1.442695, %v720_v41 }
 0x211   :  { %v725_v44 = vmul.f32 1.442695, %v719_v42 }
 0x212   :  { %3983 = vpow2.f32 %v727_v43 }
 0x213   :  { %3985 = vpow2.f32 %v725_v44 }
 0x218   :  { %v3980_v45 = vpop.eup %3979 }
 0x219   :  { %v3982_v46 = vpop.eup %3981  ;;  %v730_v47 = vadd.f32 1.0, %v3980_v45 }
 0x21a   :  { %v729_v48 = vadd.f32 1.0, %v3982_v46 }
 0x21b   :  { %3987 = vrcp.f32 %v730_v47 }
 0x21c   :  { %v3984_v49 = vpop.eup %3983  ;;  %3989 = vrcp.f32 %v729_v48 }
 0x21d   :  { %v3986_v51 = vpop.eup %3985  ;;  %v732_v52 = vadd.f32 1.0, %v3984_v49 }
 0x21e   :  { %v731_v53 = vadd.f32 1.0, %v3986_v51 }
 0x21f   :  { %3991 = vrcp.f32 %v732_v52 }
 0x220   :  { %3993 = vrcp.f32 %v731_v53 }
 0x225   :  { %v3988_v54 = vpop.eup %3987 }
 0x226   :  { %v3990_v55 = vpop.eup %3989  ;;  %v738_v56 = vmul.f32 %v3988_v54, %v714_v24 }
 0x227   :  { %v737_v57 = vmul.f32 %v3990_v55, %v713_v26 }
 0x229   :  { %v3992_v58 = vpop.eup %3991  ;;  %v3870_v59 = vpack.c.bf16 %v738_v56, %v737_v57  ;;  %v1431_v56 = vld [vmem:[#allocation2 + $0x360] sm:$0xff]  ;;  %v1432_v57 = vld [vmem:[#allocation2 + $0x368] sm:$0xff] }
 0x22a   :  { %v3994_v61 = vpop.eup %3993  ;;  %v740_v62 = vmul.f32 %v3992_v58, %v716_v38  ;;  %v3883_v58 = vpack.c.bf16 %v1432_v57, %v1431_v56 }
 0x22b   :  { %v739_v0 = vmul.f32 %v3994_v61, %v715_v40  ;;  %3871 = vmatpush3.bf16.msra.mxu1 %v3870_v59  ;;  %v1570_v59 = vld [vmem:[#allocation2 + $0x370] sm:$0xff]  ;;  %v1571_v61 = vld [vmem:[#allocation2 + $0x378] sm:$0xff] }
 0x22c   :  { %3872 = vmatprep.subr.bf16.mxu1 %v4115_v27 }
 0x22d   :  { %v3873_v1 = vpack.c.bf16 %v740_v62, %v739_v0  ;;  %v3886_v62 = vpack.c.bf16 %v1571_v61, %v1570_v59  ;;  %v4388_v0 = vld [vmem:[#allocation2 + $0x358] ss:$0 sm:$0xff] }
 0x22f   :  { %3874 = vmatpush3.bf16.msra.mxu1 %v3873_v1 }
 0x230   :  { %3882 = vmatprep.subr.bf16.mxu1 %v4115_v27 }
 0x232   :  { %3410 = vmatmul.mubr.msk.f32.vlgmr.msra.gmra.mrb[6].mxu1 %vm465_vm1, %v741_v2 }
 0x233   :  { %3412 = vmatprep.mubr.msk.f32.mxu1 %vm4114_vm3, %v4113_v50  ;;  %3884 = vmatpush3.bf16.msra.mxu1 %v3883_v58 }
 0x234   :  { %3888 = vmatprep.subr.bf16.mxu1 %v4115_v27 }
 0x236   :  { %3413 = vmatmul.mubr.msk.f32.gmra.mrb[8].mxu1 %vm465_vm1, %v742_v3 }
 0x237   :  { %3415 = vmatprep.mubr.msk.f32.mxu1 %vm4114_vm3, %v4113_v50 }
 0x23a   :  { %3416 = vmatmul.mubr.msk.f32.gmra.mrb[10].mxu1 %vm465_vm1, %v743_v4 }
 0x23b   :  { %3418 = vmatprep.mubr.msk.f32.mxu1 %vm4114_vm3, %v4113_v50 }
 0x23e   :  { %3419 = vmatmul.mubr.msk.f32.gmra.mrb[12].mxu1 %vm465_vm1, %v744_v5 }
 0x23f   :  { %3421 = vmatprep.mubr.msk.f32.mxu1 %vm4114_vm3, %v4113_v50 }
 0x242   :  { %3422 = vmatmul.mubr.msk.f32.gmra.mrb[14].mxu1 %vm465_vm1, %v745_v6 }
 0x243   :  { %3424 = vmatprep.mubr.msk.f32.mxu1 %vm4114_vm3, %v4113_v50 }
 0x246   :  { %3425 = vmatmul.mubr.msk.f32.gmra.mrb[16].mxu1 %vm465_vm1, %v746_v7 }
 0x247   :  { %3427 = vmatprep.mubr.msk.f32.mxu1 %vm4114_vm3, %v4113_v50 }
 0x24a   :  { %3428 = vmatmul.mubr.msk.f32.gmra.mrb[18].mxu1 %vm465_vm1, %v747_v8 }
 0x24b   :  { %3430 = vmatprep.mubr.msk.f32.mxu1 %vm4114_vm3, %v4113_v50 }
 0x24e   :  { %3431 = vmatmul.mubr.msk.f32.gmra.mrb[20].mxu1 %vm465_vm1, %v748_v9 }
 0x24f   :  { %3433 = vmatprep.mubr.msk.f32.mxu1 %vm4114_vm3, %v4113_v50 }
 0x252   :  { %3434 = vmatmul.mubr.msk.f32.gmra.mrb[22].mxu1 %vm465_vm1, %v749_v10 }
 0x253   :  { %3502 = vmatprep.mubr.msk.f32.mxu1 %vm4114_vm3, %v4113_v50 }
 0x305   :  { %v4275_v15 = vpop.f32.mrb[6].mxu1 }
 0x306   :  { %v3411_v16 = vpop.f32.mrb[7].mxu1  ;;  %3441 = vmatmul.mubr.msk.f32.vlgmr.msra.gmra.mrb[22].mxu0 %vm1040_vm6, %v4275_v15 }
 0x307   :  { %3443 = vmatprep.mubr.msk.f32.mxu0 %vm4114_vm3, %v4113_v50  ;;  %3881 = vmatpush3.bf16.msk.msra.mxu0 %vm4271_vm8, %v3879_v13 }
 0x308   :  { %3885 = vmatprep.subr.bf16.mxu0 %v4115_v27 }
 0x309   :  { %v4284_v17 = vpop.f32.mrb[8].mxu1 }
 0x30a   :  { %v3414_v18 = vpop.f32.mrb[9].mxu1  ;;  %3444 = vmatmul.mubr.msk.f32.gmra.mrb[24].mxu0 %vm1040_vm6, %v4284_v17 }
 0x30b   :  { %3446 = vmatprep.mubr.msk.f32.mxu0 %vm4114_vm3, %v4113_v50 }
 0x30d   :  { %v4290_v19 = vpop.f32.mrb[10].mxu1 }
 0x30e   :  { %v3417_v20 = vpop.f32.mrb[11].mxu1  ;;  %3447 = vmatmul.mubr.msk.f32.gmra.mrb[26].mxu0 %vm1040_vm6, %v4290_v19 }
 0x30f   :  { %3449 = vmatprep.mubr.msk.f32.mxu0 %vm4114_vm3, %v4113_v50 }
 0x311   :  { %v4296_v21 = vpop.f32.mrb[12].mxu1 }
 0x312   :  { %v3420_v22 = vpop.f32.mrb[13].mxu1  ;;  %3450 = vmatmul.mubr.msk.f32.gmra.mrb[28].mxu0 %vm1040_vm6, %v4296_v21 }
 0x313   :  { %3452 = vmatprep.mubr.msk.f32.mxu0 %vm4114_vm3, %v4113_v50 }
 0x315   :  { %v4302_v23 = vpop.f32.mrb[14].mxu1 }
 0x316   :  { %v3423_v24 = vpop.f32.mrb[15].mxu1  ;;  %3453 = vmatmul.mubr.msk.f32.gmra.mrb[30].mxu0 %vm1040_vm6, %v4302_v23 }
 0x317   :  { %3455 = vmatprep.mubr.msk.f32.mxu0 %vm4114_vm3, %v4113_v50 }
 0x319   :  { %v4308_v60 = vpop.f32.mrb[16].mxu1 }
 0x31a   :  { %v3426_v25 = vpop.f32.mrb[17].mxu1  ;;  %3456 = vmatmul.mubr.msk.f32.gmra.mrb[32].mxu0 %vm1040_vm6, %v4308_v60 }
 0x31b   :  { %3458 = vmatprep.mubr.msk.f32.mxu0 %vm4114_vm3, %v4113_v50 }
 0x31d   :  { %v4314_v26 = vpop.f32.mrb[18].mxu1 }
 0x31e   :  { %v3429_v28 = vpop.f32.mrb[19].mxu1  ;;  %3459 = vmatmul.mubr.msk.f32.gmra.mrb[34].mxu0 %vm1040_vm6, %v4314_v26 }
 0x31f   :  { %3461 = vmatprep.mubr.msk.f32.mxu0 %vm4114_vm3, %v4113_v50 }
 0x321   :  { %v4320_v30 = vpop.f32.mrb[20].mxu1 }
 0x322   :  { %v3432_v31 = vpop.f32.mrb[21].mxu1  ;;  %3462 = vmatmul.mubr.msk.f32.gmra.mrb[36].mxu0 %vm1040_vm6, %v4320_v30 }
 0x323   :  { %3464 = vmatprep.mubr.msk.f32.mxu0 %vm4114_vm3, %v4113_v50 }
 0x325   :  { %v4326_v33 = vpop.f32.mrb[22].mxu1 }
 0x326   :  { %v3435_v36 = vpop.f32.mrb[23].mxu1  ;;  %3465 = vmatmul.mubr.msk.f32.gmra.mrb[38].mxu0 %vm1040_vm6, %v4326_v33 }
 0x327   :  { %3471 = vmatprep.mubr.msk.f32.mxu0 %vm4114_vm3, %v4113_v50 }
 0x3d9   :  { %v4332_v37 = vpop.f32.mrb[22].mxu0 }
 0x3da   :  { %v3442_v38 = vpop.f32.mrb[23].mxu0  ;;  %3472 = vmatmul.mubr.msk.f32.vlgmr.msra.gmra.mrb[40].mxu0 %vm1185_vm9, %v4332_v37 }
 0x3db   :  { %3474 = vmatprep.mubr.msk.f32.mxu0 %vm4114_vm3, %v4113_v50  ;;  %3887 = vmatpush3.bf16.msra.mxu0 %v3886_v62 }
 0x3dc   :  { %3892 = vmatprep.subr.bf16.mxu0 %v4115_v27 }
 0x3dd   :  { %v4338_v39 = vpop.f32.mrb[24].mxu0 }
 0x3de   :  { %v3445_v40 = vpop.f32.mrb[25].mxu0  ;;  %3475 = vmatmul.mubr.msk.f32.gmra.mrb[42].mxu0 %vm1185_vm9, %v4338_v39 }
 0x3df   :  { %3477 = vmatprep.mubr.msk.f32.mxu0 %vm4114_vm3, %v4113_v50 }
 0x3e1   :  { %v4344_v41 = vpop.f32.mrb[26].mxu0 }
 0x3e2   :  { %v3448_v42 = vpop.f32.mrb[27].mxu0  ;;  %3478 = vmatmul.mubr.msk.f32.gmra.mrb[44].mxu0 %vm1185_vm9, %v4344_v41 }
 0x3e3   :  { %3480 = vmatprep.mubr.msk.f32.mxu0 %vm4114_vm3, %v4113_v50 }
 0x3e5   :  { %v4350_v43 = vpop.f32.mrb[28].mxu0 }
 0x3e6   :  { %v3451_v44 = vpop.f32.mrb[29].mxu0  ;;  %3481 = vmatmul.mubr.msk.f32.gmra.mrb[46].mxu0 %vm1185_vm9, %v4350_v43 }
 0x3e7   :  { %3483 = vmatprep.mubr.msk.f32.mxu0 %vm4114_vm3, %v4113_v50 }
 0x3e9   :  { %v4356_v45 = vpop.f32.mrb[30].mxu0 }
 0x3ea   :  { %v3454_v46 = vpop.f32.mrb[31].mxu0  ;;  %3484 = vmatmul.mubr.msk.f32.gmra.mrb[48].mxu0 %vm1185_vm9, %v4356_v45 }
 0x3eb   :  { %3486 = vmatprep.mubr.msk.f32.mxu0 %vm4114_vm3, %v4113_v50 }
 0x3ed   :  { %v4362_v47 = vpop.f32.mrb[32].mxu0 }
 0x3ee   :  { %v3457_v48 = vpop.f32.mrb[33].mxu0  ;;  %3487 = vmatmul.mubr.msk.f32.gmra.mrb[50].mxu0 %vm1185_vm9, %v4362_v47 }
 0x3ef   :  { %3489 = vmatprep.mubr.msk.f32.mxu0 %vm4114_vm3, %v4113_v50 }
 0x3f1   :  { %v4368_v49 = vpop.f32.mrb[34].mxu0 }
 0x3f2   :  { %v3460_v51 = vpop.f32.mrb[35].mxu0  ;;  %3490 = vmatmul.mubr.msk.f32.gmra.mrb[52].mxu0 %vm1185_vm9, %v4368_v49 }
 0x3f3   :  { %3492 = vmatprep.mubr.msk.f32.mxu0 %vm4114_vm3, %v4113_v50 }
 0x3f5   :  { %v4374_v52 = vpop.f32.mrb[36].mxu0 }
 0x3f6   :  { %v3463_v53 = vpop.f32.mrb[37].mxu0  ;;  %3493 = vmatmul.mubr.msk.f32.gmra.mrb[54].mxu0 %vm1185_vm9, %v4374_v52 }
 0x3f7   :  { %3495 = vmatprep.mubr.msk.f32.mxu0 %vm4114_vm3, %v4113_v50 }
 0x3f9   :  { %v4380_v54 = vpop.f32.mrb[38].mxu0 }
 0x3fa   :  { %v3466_v55 = vpop.f32.mrb[39].mxu0  ;;  %3496 = vmatmul.mubr.msk.f32.gmra.mrb[56].mxu0 %vm1185_vm9, %v4380_v54 }
 0x3fb   :  { %3533 = vmatprep.mubr.msk.f32.mxu0 %vm4114_vm3, %v4113_v50 }
 0x4ad   :  { %v1283_v1 = vpop.f32.mrb[40].mxu0 }
 0x4ae   :  { %v4391_v2 = vadd.f32 %v4388_v0, %v1283_v1  ;;  %v3473_v3 = vpop.f32.mrb[41].mxu0 }
 0x4b0   :  { %v1336_v4 = vand.u32 2147483647, %v4391_v2 }
 0x4b1   :  { %v1288_v5 = vpop.f32.mrb[42].mxu0 }
 0x4b2   :  { %v1345_v6 = vsub.f32 0.0, %v1336_v4  ;;  %v4395_v7 = vadd.f32 %v4388_v0, %v1288_v5  ;;  %v3476_v8 = vpop.f32.mrb[43].mxu0 }
 0x4b4   :  { %v1354_v9 = vmul.f32 1.442695, %v1345_v6  ;;  %v1337_v10 = vand.u32 2147483647, %v4395_v7 }
 0x4b5   :  { %v1293_v11 = vpop.f32.mrb[44].mxu0 }
 0x4b6   :  { %3995 = vpow2.f32 %v1354_v9  ;;  %v1346_v12 = vsub.f32 0.0, %v1337_v10  ;;  %v4399_v13 = vadd.f32 %v4388_v0, %v1293_v11  ;;  %v3479_v16 = vpop.f32.mrb[45].mxu0 }
 0x4b8   :  { %v1356_v18 = vmul.f32 1.442695, %v1346_v12  ;;  %v1338_v20 = vand.u32 2147483647, %v4399_v13 }
 0x4b9   :  { %v1298_v22 = vpop.f32.mrb[46].mxu0 }
 0x4ba   :  { %3997 = vpow2.f32 %v1356_v18  ;;  %v1347_v24 = vsub.f32 0.0, %v1338_v20  ;;  %v4403_v25 = vadd.f32 %v4388_v0, %v1298_v22  ;;  %v3482_v28 = vpop.f32.mrb[47].mxu0  ;;  %v1709_v22 = vld [vmem:[#allocation2 + $0x380] sm:$0xff] }
 0x4bc   :  { %v1358_v31 = vmul.f32 1.442695, %v1347_v24  ;;  %v1339_v36 = vand.u32 2147483647, %v4403_v25 }
 0x4bd   :  { %v1303_v38 = vpop.f32.mrb[48].mxu0 }
 0x4be   :  { %3999 = vpow2.f32 %v1358_v31  ;;  %v1348_v40 = vsub.f32 0.0, %v1339_v36  ;;  %v4407_v42 = vadd.f32 %v4388_v0, %v1303_v38  ;;  %v3485_v44 = vpop.f32.mrb[49].mxu0  ;;  %v1710_v36 = vld [vmem:[#allocation2 + $0x388] sm:$0x1] }
 0x4c0   :  { %v3996_v46 = vpop.eup %3995  ;;  %v1360_v48 = vmul.f32 1.442695, %v1348_v40  ;;  %v1340_v51 = vand.u32 2147483647, %v4407_v42  ;;  %v1327_v40 = vmax.f32 %v4391_v2, 0.0  ;;  %v1328_v2 = vmax.f32 %v4395_v7, 0.0 }
 0x4c1   :  { %v1372_v53 = vadd.f32 1.0, %v3996_v46  ;;  %v1308_v55 = vpop.f32.mrb[50].mxu0 }
 0x4c2   :  { %4001 = vpow2.f32 %v1360_v48  ;;  %v1349_v56 = vsub.f32 0.0, %v1340_v51  ;;  %v4411_v57 = vadd.f32 %v4388_v0, %v1308_v55  ;;  %v3488_v58 = vpop.f32.mrb[51].mxu0  ;;  %v1833_v48 = vld [vmem:[#allocation2 + $0x390] sm:$0xff] }
 0x4c3   :  { %4003 = vlog2.f32 %v1372_v53  ;;  %v1834_v58 = vld [vmem:[#allocation2 + $0x398] sm:$0x1] }
 0x4c4   :  { %v3998_v59 = vpop.eup %3997  ;;  %v1362_v61 = vmul.f32 1.442695, %v1349_v56  ;;  %v1341_v62 = vand.u32 2147483647, %v4411_v57 }
 0x4c5   :  { %v1373_v1 = vadd.f32 1.0, %v3998_v59  ;;  %v1313_v3 = vpop.f32.mrb[52].mxu0  ;;  %v3889_v59 = vpack.c.bf16 %v1710_v36, %v1709_v22 }
 0x4c6   :  { %4005 = vpow2.f32 %v1362_v61  ;;  %v1350_v4 = vsub.f32 0.0, %v1341_v62  ;;  %v4415_v5 = vadd.f32 %v4388_v0, %v1313_v3  ;;  %v3491_v6 = vpop.f32.mrb[53].mxu0 }
 0x4c7   :  { %4007 = vlog2.f32 %v1373_v1 }
 0x4c8   :  { %v4000_v8 = vpop.eup %3999  ;;  %v1364_v9 = vmul.f32 1.442695, %v1350_v4  ;;  %v1342_v10 = vand.u32 2147483647, %v4415_v5 }
 0x4c9   :  { %v1374_v11 = vadd.f32 1.0, %v4000_v8  ;;  %v1318_v12 = vpop.f32.mrb[54].mxu0  ;;  %v3893_v8 = vpack.c.bf16 %v1834_v58, %v1833_v48 }
 0x4ca   :  { %4009 = vpow2.f32 %v1364_v9  ;;  %v1351_v16 = vsub.f32 0.0, %v1342_v10  ;;  %v4419_v18 = vadd.f32 %v4388_v0, %v1318_v12  ;;  %v3494_v20 = vpop.f32.mrb[55].mxu0 }
 0x4cb   :  { %4011 = vlog2.f32 %v1374_v11 }
 0x4cc   :  { %v4002_v24 = vpop.eup %4001  ;;  %v1366_v28 = vmul.f32 1.442695, %v1351_v16  ;;  %v1343_v31 = vand.u32 2147483647, %v4419_v18 }
 0x4cd   :  { %v4004_v38 = vpop.eup %4003  ;;  %v1375_v44 = vadd.f32 1.0, %v4002_v24  ;;  %v1323_v46 = vpop.f32.mrb[56].mxu0  ;;  %v1329_v24 = vmax.f32 %v4399_v13, 0.0 }
 0x4ce   :  { %v1382_v51 = vmul.f32 0.6931472, %v4004_v38  ;;  %4013 = vpow2.f32 %v1366_v28  ;;  %v1352_v53 = vsub.f32 0.0, %v1343_v31  ;;  %v4424_v55 = vadd.f32 %v4388_v0, %v1323_v46  ;;  %v3497_v56 = vpop.f32.mrb[57].mxu0 }
 0x4cf   :  { %4015 = vlog2.f32 %v1375_v44 }
 0x4d0   :  { %v4006_v61 = vpop.eup %4005  ;;  %v1399_v62 = vadd.f32 %v1382_v51, %v1327_v40  ;;  %v1368_v1 = vmul.f32 1.442695, %v1352_v53  ;;  %v1344_v3 = vand.u32 2147483647, %v4424_v55  ;;  %v1330_v40 = vmax.f32 %v4403_v25, 0.0 }
 0x4d1   :  { %v4008_v4 = vpop.eup %4007  ;;  %v1376_v6 = vadd.f32 1.0, %v4006_v61  ;;  %v1331_v25 = vmax.f32 %v4407_v42, 0.0  ;;  %v1332_v42 = vmax.f32 %v4411_v57, 0.0 }
 0x4d2   :  { %v1408_v9 = vmul.f32 %v1399_v62, %v4275_v15  ;;  %v1384_v10 = vmul.f32 0.6931472, %v4008_v4  ;;  %4017 = vpow2.f32 %v1368_v1  ;;  %v1353_v0 = vsub.f32 0.0, %v1344_v3  ;;  %3503 = vmatmul.mubr.msk.f32.vlgmr.msra.gmra.mrb[24].mxu1 %vm1040_vm6, %v1399_v62 }
 0x4d3   :  { %4019 = vlog2.f32 %v1376_v6  ;;  %3505 = vmatprep.mubr.msk.f32.mxu1 %vm4114_vm3, %v4113_v50  ;;  %3891 = vmatpush3.bf16.msk.msra.mxu1 %vm4271_vm8, %v3889_v59 }
 0x4d4   :  { %v4010_v11 = vpop.eup %4009  ;;  %v1400_v12 = vadd.f32 %v1384_v10, %v1328_v2  ;;  %v1370_v16 = vmul.f32 1.442695, %v1353_v0  ;;  %3534 = vmatmul.mubr.msk.f32.vlgmr.msra.gmra.mrb[58].mxu0 %vm1040_vm6, %v1408_v9  ;;  %3896 = vmatprep.subr.bf16.mxu1 %v4115_v27  ;;  %v1333_v9 = vmax.f32 %v4415_v5, 0.0 }
 0x4d5   :  { %v4012_v7 = vpop.eup %4011  ;;  %v1377_v20 = vadd.f32 1.0, %v4010_v11  ;;  %3536 = vmatprep.mubr.msk.f32.mxu0 %vm4114_vm3, %v4113_v50  ;;  %3895 = vmatpush3.bf16.msk.msra.mxu0 %vm4271_vm8, %v3893_v8 }
 0x4d6   :  { %v1409_v22 = vmul.f32 %v1400_v12, %v4284_v17  ;;  %v1386_v28 = vmul.f32 0.6931472, %v4012_v7  ;;  %4021 = vpow2.f32 %v1370_v16  ;;  %3506 = vmatmul.mubr.msk.f32.gmra.mrb[26].mxu1 %vm1040_vm6, %v1400_v12  ;;  %3908 = vmatprep.subr.bf16.mxu0 %v4115_v27  ;;  %v1334_v12 = vmax.f32 %v4419_v18, 0.0 }
 0x4d7   :  { %4023 = vlog2.f32 %v1377_v20  ;;  %3508 = vmatprep.mubr.msk.f32.mxu1 %vm4114_vm3, %v4113_v50 }
 0x4d8   :  { %v4014_v31 = vpop.eup %4013  ;;  %v1401_v36 = vadd.f32 %v1386_v28, %v1329_v24  ;;  %3537 = vmatmul.mubr.msk.f32.gmra.mrb[60].mxu0 %vm1040_vm6, %v1409_v22  ;;  %v1335_v22 = vmax.f32 %v4424_v55, 0.0 }
 0x4d9   :  { %v4016_v14 = vpop.eup %4015  ;;  %v1378_v38 = vadd.f32 1.0, %v4014_v31  ;;  %3539 = vmatprep.mubr.msk.f32.mxu0 %vm4114_vm3, %v4113_v50 }
 0x4da   :  { %v1410_v13 = vmul.f32 %v1401_v36, %v4290_v19  ;;  %v1388_v44 = vmul.f32 0.6931472, %v4016_v14  ;;  %3509 = vmatmul.mubr.msk.f32.gmra.mrb[28].mxu1 %vm1040_vm6, %v1401_v36 }
 0x4db   :  { %4025 = vlog2.f32 %v1378_v38  ;;  %3511 = vmatprep.mubr.msk.f32.mxu1 %vm4114_vm3, %v4113_v50 }
 0x4dc   :  { %v4018_v46 = vpop.eup %4017  ;;  %v1402_v48 = vadd.f32 %v1388_v44, %v1330_v40  ;;  %3540 = vmatmul.mubr.msk.f32.gmra.mrb[62].mxu0 %vm1040_vm6, %v1410_v13 }
 0x4dd   :  { %v4020_v51 = vpop.eup %4019  ;;  %v1379_v53 = vadd.f32 1.0, %v4018_v46  ;;  %3542 = vmatprep.mubr.msk.f32.mxu0 %vm4114_vm3, %v4113_v50 }
 0x4de   :  { %v1411_v56 = vmul.f32 %v1402_v48, %v4296_v21  ;;  %v1390_v58 = vmul.f32 0.6931472, %v4020_v51  ;;  %3512 = vmatmul.mubr.msk.f32.gmra.mrb[30].mxu1 %vm1040_vm6, %v1402_v48 }
 0x4df   :  { %4027 = vlog2.f32 %v1379_v53  ;;  %3514 = vmatprep.mubr.msk.f32.mxu1 %vm4114_vm3, %v4113_v50 }
 0x4e0   :  { %v4022_v59 = vpop.eup %4021  ;;  %v1403_v61 = vadd.f32 %v1390_v58, %v1331_v25  ;;  %3543 = vmatmul.mubr.msk.f32.gmra.mrb[64].mxu0 %vm1040_vm6, %v1411_v56 }
 0x4e1   :  { %v4024_v62 = vpop.eup %4023  ;;  %v1380_v1 = vadd.f32 1.0, %v4022_v59  ;;  %3545 = vmatprep.mubr.msk.f32.mxu0 %vm4114_vm3, %v4113_v50 }
 0x4e2   :  { %v1412_v3 = vmul.f32 %v1403_v61, %v4302_v23  ;;  %v1392_v4 = vmul.f32 0.6931472, %v4024_v62  ;;  %3515 = vmatmul.mubr.msk.f32.gmra.mrb[32].mxu1 %vm1040_vm6, %v1403_v61 }
 0x4e3   :  { %4029 = vlog2.f32 %v1380_v1  ;;  %3517 = vmatprep.mubr.msk.f32.mxu1 %vm4114_vm3, %v4113_v50 }
 0x4e4   :  { %v1404_v2 = vadd.f32 %v1392_v4, %v1332_v42  ;;  %3546 = vmatmul.mubr.msk.f32.gmra.mrb[66].mxu0 %vm1040_vm6, %v1412_v3 }
 0x4e5   :  { %v4026_v6 = vpop.eup %4025  ;;  %3548 = vmatprep.mubr.msk.f32.mxu0 %vm4114_vm3, %v4113_v50 }
 0x4e6   :  { %v1413_v8 = vmul.f32 %v1404_v2, %v4308_v60  ;;  %v1394_v10 = vmul.f32 0.6931472, %v4026_v6  ;;  %3518 = vmatmul.mubr.msk.f32.gmra.mrb[34].mxu1 %vm1040_vm6, %v1404_v2 }
 0x4e7   :  { %3520 = vmatprep.mubr.msk.f32.mxu1 %vm4114_vm3, %v4113_v50 }
 0x4e8   :  { %v1405_v57 = vadd.f32 %v1394_v10, %v1333_v9  ;;  %3549 = vmatmul.mubr.msk.f32.gmra.mrb[68].mxu0 %vm1040_vm6, %v1413_v8  ;;  %v2277_v10 = vld [vmem:[#allocation2 + $0x3b8] sm:$0xff] }
 0x4e9   :  { %v4028_v0 = vpop.eup %4027  ;;  %3551 = vmatprep.mubr.msk.f32.mxu0 %vm4114_vm3, %v4113_v50 }
 0x4ea   :  { %v1414_v11 = vmul.f32 %v1405_v57, %v4314_v26  ;;  %v1396_v16 = vmul.f32 0.6931472, %v4028_v0  ;;  %3521 = vmatmul.mubr.msk.f32.gmra.mrb[36].mxu1 %vm1040_vm6, %v1405_v57  ;;  %v2278_v57 = vld [vmem:[#allocation2 + $0x3c0] sm:$0xff] }
 0x4eb   :  { %3523 = vmatprep.mubr.msk.f32.mxu1 %vm4114_vm3, %v4113_v50 }
 0x4ec   :  { %v1406_v5 = vadd.f32 %v1396_v16, %v1334_v12  ;;  %3552 = vmatmul.mubr.msk.f32.gmra.mrb[70].mxu0 %vm1040_vm6, %v1414_v11  ;;  %v4594_v16 = vld [vmem:[#allocation2 + $0x3f8] sm:$0xff] }
 0x4ed   :  { %v4030_v7 = vpop.eup %4029  ;;  %3554 = vmatprep.mubr.msk.f32.mxu0 %vm4114_vm3, %v4113_v50 }
 0x4ee   :  { %v1415_v20 = vmul.f32 %v1406_v5, %v4320_v30  ;;  %v1398_v24 = vmul.f32 0.6931472, %v4030_v7  ;;  %3524 = vmatmul.mubr.msk.f32.gmra.mrb[38].mxu1 %vm1040_vm6, %v1406_v5  ;;  %v3921_v5 = vpack.c.bf16 %v2278_v57, %v2277_v10  ;;  %v4654_v57 = vld [vmem:[#allocation2 + $0x420] sm:$0xff] }
 0x4ef   :  { %3526 = vmatprep.mubr.msk.f32.mxu1 %vm4114_vm3, %v4113_v50 }
 0x4f0   :  { %v1407_v18 = vadd.f32 %v1398_v24, %v1335_v22  ;;  %3555 = vmatmul.mubr.msk.f32.gmra.mrb[72].mxu0 %vm1040_vm6, %v1415_v20  ;;  %v2279_v20 = vld [vmem:[#allocation2 + $0x3c8] sm:$0xff]  ;;  %v2280_v22 = vld [vmem:[#allocation2 + $0x3d0] sm:$0xff] }
 0x4f1   :  { %3557 = vmatprep.mubr.msk.f32.mxu0 %vm4114_vm3, %v4113_v50 }
 0x4f2   :  { %v1416_v28 = vmul.f32 %v1407_v18, %v4326_v33  ;;  %3527 = vmatmul.mubr.msk.f32.gmra.mrb[40].mxu1 %vm1040_vm6, %v1407_v18 }
 0x4f3   :  { %3564 = vmatprep.mubr.msk.f32.mxu1 %vm4114_vm3, %v4113_v50 }
 0x4f4   :  { %3558 = vmatmul.mubr.msk.f32.gmra.mrb[74].mxu0 %vm1040_vm6, %v1416_v28 }
 0x4f5   :  { %3595 = vmatprep.mubr.msk.f32.mxu0 %vm4114_vm3, %v4113_v50 }
 0x4f6   :  { %3565 = vmatmul.mubr.msk.f32.vlgmr.msra.gmra.mrb[42].mxu1 %vm1185_vm9, %v4332_v37 }
 0x4f7   :  { %3567 = vmatprep.mubr.msk.f32.mxu1 %vm4114_vm3, %v4113_v50 }
 0x4f8   :  { %3596 = vmatmul.mubr.msk.f32.vlgmr.msra.gmra.mrb[76].mxu0 %vm1185_vm9, %v4332_v37 }
 0x4f9   :  { %3598 = vmatprep.mubr.msk.f32.mxu0 %vm4114_vm3, %v4113_v50 }
 0x4fa   :  { %3568 = vmatmul.mubr.msk.f32.gmra.mrb[44].mxu1 %vm1185_vm9, %v4338_v39 }
 0x4fb   :  { %3570 = vmatprep.mubr.msk.f32.mxu1 %vm4114_vm3, %v4113_v50 }
 0x4fc   :  { %3599 = vmatmul.mubr.msk.f32.gmra.mrb[78].mxu0 %vm1185_vm9, %v4338_v39 }
 0x4fd   :  { %3601 = vmatprep.mubr.msk.f32.mxu0 %vm4114_vm3, %v4113_v50 }
 0x4fe   :  { %3571 = vmatmul.mubr.msk.f32.gmra.mrb[46].mxu1 %vm1185_vm9, %v4344_v41 }
 0x4ff   :  { %3573 = vmatprep.mubr.msk.f32.mxu1 %vm4114_vm3, %v4113_v50 }
 0x500   :  { %3602 = vmatmul.mubr.msk.f32.gmra.mrb[80].mxu0 %vm1185_vm9, %v4344_v41 }
 0x501   :  { %3604 = vmatprep.mubr.msk.f32.mxu0 %vm4114_vm3, %v4113_v50 }
 0x502   :  { %3574 = vmatmul.mubr.msk.f32.gmra.mrb[48].mxu1 %vm1185_vm9, %v4350_v43 }
 0x503   :  { %3576 = vmatprep.mubr.msk.f32.mxu1 %vm4114_vm3, %v4113_v50 }
 0x504   :  { %3605 = vmatmul.mubr.msk.f32.gmra.mrb[82].mxu0 %vm1185_vm9, %v4350_v43 }
 0x505   :  { %3607 = vmatprep.mubr.msk.f32.mxu0 %vm4114_vm3, %v4113_v50 }
 0x506   :  { %3577 = vmatmul.mubr.msk.f32.gmra.mrb[50].mxu1 %vm1185_vm9, %v4356_v45 }
 0x507   :  { %3579 = vmatprep.mubr.msk.f32.mxu1 %vm4114_vm3, %v4113_v50 }
 0x508   :  { %3608 = vmatmul.mubr.msk.f32.gmra.mrb[84].mxu0 %vm1185_vm9, %v4356_v45 }
 0x509   :  { %3610 = vmatprep.mubr.msk.f32.mxu0 %vm4114_vm3, %v4113_v50 }
 0x50a   :  { %3580 = vmatmul.mubr.msk.f32.gmra.mrb[52].mxu1 %vm1185_vm9, %v4362_v47 }
 0x50b   :  { %3582 = vmatprep.mubr.msk.f32.mxu1 %vm4114_vm3, %v4113_v50 }
 0x50c   :  { %3611 = vmatmul.mubr.msk.f32.gmra.mrb[86].mxu0 %vm1185_vm9, %v4362_v47 }
 0x50d   :  { %3613 = vmatprep.mubr.msk.f32.mxu0 %vm4114_vm3, %v4113_v50 }
 0x50e   :  { %3583 = vmatmul.mubr.msk.f32.gmra.mrb[54].mxu1 %vm1185_vm9, %v4368_v49 }
 0x50f   :  { %3585 = vmatprep.mubr.msk.f32.mxu1 %vm4114_vm3, %v4113_v50 }
 0x510   :  { %3614 = vmatmul.mubr.msk.f32.gmra.mrb[88].mxu0 %vm1185_vm9, %v4368_v49 }
 0x511   :  { %3616 = vmatprep.mubr.msk.f32.mxu0 %vm4114_vm3, %v4113_v50 }
 0x512   :  { %3586 = vmatmul.mubr.msk.f32.gmra.mrb[56].mxu1 %vm1185_vm9, %v4374_v52 }
 0x513   :  { %3588 = vmatprep.mubr.msk.f32.mxu1 %vm4114_vm3, %v4113_v50 }
 0x514   :  { %3617 = vmatmul.mubr.msk.f32.gmra.mrb[90].mxu0 %vm1185_vm9, %v4374_v52 }
 0x515   :  { %3619 = vmatprep.mubr.msk.f32.mxu0 %vm4114_vm3, %v4113_v50 }
 0x516   :  { %3589 = vmatmul.mubr.msk.f32.gmra.mrb[58].mxu1 %vm1185_vm9, %v4380_v54 }
 0x517   :  { %3640 = vmatprep.mubr.msk.f32.mxu1 %vm4114_vm3, %v4113_v50 }
 0x518   :  { %3620 = vmatmul.mubr.msk.f32.gmra.mrb[92].mxu0 %vm1185_vm9, %v4380_v54 }
 0x519   :  { %3685 = vmatprep.mubr.msk.f32.mxu0 %vm4114_vm3, %v4113_v50 }
 0x5a5   :  { %v1526_v37 = vpop.f32.mrb[24].mxu1 }
 0x5a6   :  { %v3504_v39 = vpop.f32.mrb[25].mxu1 }
 0x5a7   :  { %v1665_v41 = vpop.f32.mrb[58].mxu0  ;;  %v4605_v39 = vld [vmem:[#allocation2 + $0x400] sm:$0xff] }
 0x5a8   :  { %v3535_v43 = vpop.f32.mrb[59].mxu0 }
 0x5a9   :  { %v1531_v45 = vpop.f32.mrb[26].mxu1  ;;  %v3924_v43 = vpack.c.bf16 %v2280_v22, %v2279_v20 }
 0x5aa   :  { %v3897_v47 = vpack.c.bf16 %v1531_v45, %v1526_v37  ;;  %v3507_v49 = vpop.f32.mrb[27].mxu1 }
 0x5ab   :  { %v4576_v52 = vpop.f32.mrb[60].mxu0  ;;  %v2282_v49 = vld [vmem:[#allocation2 + $0x3e0] sm:$0xff] }
 0x5ac   :  { %v3538_v55 = vpop.f32.mrb[61].mxu0  ;;  %3898 = vmatpush3.bf16.msra.mxu1 %v3897_v47  ;;  %v2281_v47 = vld [vmem:[#allocation2 + $0x3d8] sm:$0xff] }
 0x5ad   :  { %v1536_v31 = vpop.f32.mrb[28].mxu1  ;;  %3899 = vmatprep.subr.bf16.mxu1 %v4115_v27 }
 0x5ae   :  { %v3510_v36 = vpop.f32.mrb[29].mxu1 }
 0x5af   :  { %v4579_v14 = vpop.f32.mrb[62].mxu0 }
 0x5b0   :  { %v3541_v54 = vpop.f32.mrb[63].mxu0 }
 0x5b1   :  { %v1541_v38 = vpop.f32.mrb[30].mxu1  ;;  %v4617_v54 = vld [vmem:[#allocation2 + $0x408] sm:$0xff] }
 0x5b2   :  { %v3900_v13 = vpack.c.bf16 %v1541_v38, %v1536_v31  ;;  %v3513_v40 = vpop.f32.mrb[31].mxu1  ;;  %v3927_v38 = vpack.c.bf16 %v2282_v49, %v2281_v47 }
 0x5b3   :  { %v4581_v44 = vpop.f32.mrb[64].mxu0  ;;  %v2283_v40 = vld [vmem:[#allocation2 + $0x3e8] sm:$0xff] }
 0x5b4   :  { %v3544_v46 = vpop.f32.mrb[65].mxu0  ;;  %3901 = vmatpush3.bf16.msra.mxu1 %v3900_v13 }
 0x5b5   :  { %v1546_v48 = vpop.f32.mrb[32].mxu1  ;;  %3902 = vmatprep.subr.bf16.mxu1 %v4115_v27  ;;  %v2284_v46 = vld [vmem:[#allocation2 + $0x3f0] sm:$0xff] }
 0x5b6   :  { %v3516_v51 = vpop.f32.mrb[33].mxu1 }
 0x5b7   :  { %v4584_v53 = vpop.f32.mrb[66].mxu0 }
 0x5b8   :  { %v3547_v56 = vpop.f32.mrb[67].mxu0 }
 0x5b9   :  { %v1551_v25 = vpop.f32.mrb[34].mxu1 }
 0x5ba   :  { %v3903_v58 = vpack.c.bf16 %v1551_v25, %v1546_v48  ;;  %v3519_v59 = vpop.f32.mrb[35].mxu1  ;;  %v4629_v25 = vld [vmem:[#allocation2 + $0x410] sm:$0xff] }
 0x5bb   :  { %v4586_v61 = vpop.f32.mrb[68].mxu0 }
 0x5bc   :  { %v3550_v62 = vpop.f32.mrb[69].mxu0  ;;  %3904 = vmatpush3.bf16.msra.mxu1 %v3903_v58  ;;  %v3930_v58 = vpack.c.bf16 %v2284_v46, %v2283_v40 }
 0x5bd   :  { %v1556_v1 = vpop.f32.mrb[36].mxu1  ;;  %3905 = vmatprep.subr.bf16.mxu1 %v4115_v27 }
 0x5be   :  { %v3522_v3 = vpop.f32.mrb[37].mxu1 }
 0x5bf   :  { %v4589_v42 = vpop.f32.mrb[70].mxu0 }
 0x5c0   :  { %v3553_v4 = vpop.f32.mrb[71].mxu0 }
 0x5c1   :  { %v1561_v2 = vpop.f32.mrb[38].mxu1  ;;  %v4641_v4 = vld [vmem:[#allocation2 + $0x418] sm:$0xff] }
 0x5c2   :  { %v3906_v6 = vpack.c.bf16 %v1561_v2, %v1556_v1  ;;  %v3525_v8 = vpop.f32.mrb[39].mxu1 }
 0x5c3   :  { %v4591_v9 = vpop.f32.mrb[72].mxu0 }
 0x5c4   :  { %v3556_v0 = vpop.f32.mrb[73].mxu0  ;;  %3907 = vmatpush3.bf16.msra.mxu1 %v3906_v6 }
 0x5c5   :  { %v1566_v11 = vpop.f32.mrb[40].mxu1  ;;  %3638 = vmatprep.subr.mxu1 %v4113_v50 }
 0x5c6   :  { %v3528_v12 = vpop.f32.mrb[41].mxu1 }
 0x5c7   :  { %v4596_v7 = vpop.f32.mrb[74].mxu0 }
 0x5c8   :  { %v3559_v24 = vpop.f32.mrb[75].mxu0  ;;  %3639 = vmatpush3.msra.mxu1 %v1566_v11 }
 0x5c9   :  { %v1780_v18 = vpop.f32.mrb[42].mxu1  ;;  %3641 = vmatmul.mubr.msk.f32.vlgmr.msra.gmra.mrb[60].mxu1 %vm1957_vm10, %v4594_v16  ;;  %3920 = vmatprep.subr.bf16.mxu1 %v4115_v27 }
 0x5ca   :  { %v4601_v28 = vmul.f32 %v1780_v18, %v1665_v41  ;;  %v3566_v37 = vpop.f32.mrb[43].mxu1  ;;  %3922 = vmatpush3.bf16.msra.mxu1 %v3921_v5  ;;  %3643 = vmatprep.mubr.msk.f32.mxu1 %vm4114_vm3, %v4113_v50 }
 0x5cb   :  { %v4607_v45 = vpop.f32.mrb[76].mxu0  ;;  %3923 = vmatprep.subr.bf16.mxu1 %v4115_v27 }
 0x5cc   :  { %v3597_v55 = vpop.f32.mrb[77].mxu0 }
 0x5cd   :  { %v1785_v31 = vpop.f32.mrb[44].mxu1  ;;  %3644 = vmatmul.mubr.msk.f32.gmra.mrb[62].mxu1 %vm1957_vm10, %v4605_v39 }
 0x5ce   :  { %v4613_v41 = vmul.f32 %v1785_v31, %v4576_v52  ;;  %v3569_v36 = vpop.f32.mrb[45].mxu1  ;;  %3925 = vmatpush3.bf16.msra.mxu1 %v3924_v43  ;;  %3646 = vmatprep.mubr.msk.f32.mxu1 %vm4114_vm3, %v4113_v50 }
 0x5cf   :  { %v4619_v13 = vpop.f32.mrb[78].mxu0  ;;  %3926 = vmatprep.subr.bf16.mxu1 %v4115_v27 }
 0x5d0   :  { %v3600_v48 = vpop.f32.mrb[79].mxu0 }
 0x5d1   :  { %v1790_v51 = vpop.f32.mrb[46].mxu1  ;;  %3647 = vmatmul.mubr.msk.f32.gmra.mrb[64].mxu1 %vm1957_vm10, %v4617_v54 }
 0x5d2   :  { %v4625_v52 = vmul.f32 %v1790_v51, %v4579_v14  ;;  %v3572_v56 = vpop.f32.mrb[47].mxu1  ;;  %3928 = vmatpush3.bf16.msra.mxu1 %v3927_v38  ;;  %3649 = vmatprep.mubr.msk.f32.mxu1 %vm4114_vm3, %v4113_v50 }
 0x5d3   :  { %v4631_v59 = vpop.f32.mrb[80].mxu0  ;;  %3929 = vmatprep.subr.bf16.mxu1 %v4115_v27 }
 0x5d4   :  { %v3603_v62 = vpop.f32.mrb[81].mxu0 }
 0x5d5   :  { %v1795_v1 = vpop.f32.mrb[48].mxu1  ;;  %3650 = vmatmul.mubr.msk.f32.gmra.mrb[66].mxu1 %vm1957_vm10, %v4629_v25 }
 0x5d6   :  { %v4637_v14 = vmul.f32 %v1795_v1, %v4581_v44  ;;  %v3575_v3 = vpop.f32.mrb[49].mxu1  ;;  %3931 = vmatpush3.bf16.msra.mxu1 %v3930_v58  ;;  %3652 = vmatprep.mubr.msk.f32.mxu1 %vm4114_vm3, %v4113_v50 }
 0x5d7   :  { %v4643_v2 = vpop.f32.mrb[82].mxu0  ;;  %3779 = vmatprep.subr.msk.mxu1 %vm787_vm2, %v4177_v63 }
 0x5d8   :  { %v3606_v6 = vpop.f32.mrb[83].mxu0 }
 0x5d9   :  { %v1800_v8 = vpop.f32.mrb[50].mxu1  ;;  %3653 = vmatmul.mubr.msk.f32.gmra.mrb[68].mxu1 %vm1957_vm10, %v4641_v4 }
 0x5da   :  { %v4650_v44 = vmul.f32 %v1800_v8, %v4584_v53  ;;  %v3578_v10 = vpop.f32.mrb[51].mxu1  ;;  %3655 = vmatprep.mubr.msk.f32.mxu1 %vm4114_vm3, %v4113_v50  ;;  %v4665_v53 = vld [vmem:[#allocation2 + $0x428] sm:$0xff] }
 0x5db   :  { %v4656_v0 = vpop.f32.mrb[84].mxu0 }
 0x5dc   :  { %v3609_v11 = vpop.f32.mrb[85].mxu0 }
 0x5dd   :  { %v1805_v12 = vpop.f32.mrb[52].mxu1  ;;  %3656 = vmatmul.mubr.msk.f32.gmra.mrb[70].mxu1 %vm1957_vm10, %v4654_v57 }
 0x5de   :  { %v4661_v5 = vmul.f32 %v1805_v12, %v4586_v61  ;;  %v3581_v20 = vpop.f32.mrb[53].mxu1  ;;  %3658 = vmatprep.mubr.msk.f32.mxu1 %vm4114_vm3, %v4113_v50  ;;  %v4676_v61 = vld [vmem:[#allocation2 + $0x430] sm:$0xff] }
 0x5df   :  { %v4667_v22 = vpop.f32.mrb[86].mxu0 }
 0x5e0   :  { %v3612_v24 = vpop.f32.mrb[87].mxu0 }
 0x5e1   :  { %v1810_v18 = vpop.f32.mrb[54].mxu1  ;;  %3659 = vmatmul.mubr.msk.f32.gmra.mrb[72].mxu1 %vm1957_vm10, %v4665_v53 }
 0x5e2   :  { %v4672_v37 = vmul.f32 %v1810_v18, %v4589_v42  ;;  %v3584_v43 = vpop.f32.mrb[55].mxu1  ;;  %3661 = vmatprep.mubr.msk.f32.mxu1 %vm4114_vm3, %v4113_v50  ;;  %v4687_v42 = vld [vmem:[#allocation2 + $0x438] sm:$0xff] }
 0x5e3   :  { %v4678_v47 = vpop.f32.mrb[88].mxu0 }
 0x5e4   :  { %v3615_v49 = vpop.f32.mrb[89].mxu0 }
 0x5e5   :  { %v1815_v55 = vpop.f32.mrb[56].mxu1  ;;  %3662 = vmatmul.mubr.msk.f32.gmra.mrb[74].mxu1 %vm1957_vm10, %v4676_v61 }
 0x5e6   :  { %v4683_v31 = vmul.f32 %v1815_v55, %v4591_v9  ;;  %v3587_v36 = vpop.f32.mrb[57].mxu1  ;;  %3664 = vmatprep.mubr.msk.f32.mxu1 %vm4114_vm3, %v4113_v50 }
 0x5e7   :  { %v4689_v38 = vpop.f32.mrb[90].mxu0 }
 0x5e8   :  { %v3618_v40 = vpop.f32.mrb[91].mxu0 }
 0x5e9   :  { %v1820_v46 = vpop.f32.mrb[58].mxu1  ;;  %3665 = vmatmul.mubr.msk.f32.gmra.mrb[76].mxu1 %vm1957_vm10, %v4687_v42 }
 0x5ea   :  { %v4694_v48 = vmul.f32 %v1820_v46, %v4596_v7  ;;  %v3590_v51 = vpop.f32.mrb[59].mxu1  ;;  %3728 = vmatprep.mubr.msk.f32.mxu1 %vm4114_vm3, %v4113_v50 }
 0x5eb   :  { %v4698_v9 = vpop.f32.mrb[92].mxu0 }
 0x5ec   :  { %v3621_v56 = vpop.f32.mrb[93].mxu0 }
 0x69c   :  { %v4700_v58 = vpop.f32.mrb[60].mxu1 }
 0x69d   :  { %v2113_v62 = vsub.f32 0.0, %v4700_v58  ;;  %v3642_v1 = vpop.f32.mrb[61].mxu1 }
 0x69f   :  { %v2122_v3 = vmul.f32 1.442695, %v2113_v62 }
 0x6a0   :  { %v4703_v6 = vpop.f32.mrb[62].mxu1 }
 0x6a1   :  { %4031 = vpow2.f32 %v2122_v3  ;;  %v2114_v8 = vsub.f32 0.0, %v4703_v6  ;;  %v3645_v7 = vpop.f32.mrb[63].mxu1 }
 0x6a3   :  { %v2124_v10 = vmul.f32 1.442695, %v2114_v8 }
 0x6a4   :  { %v4706_v11 = vpop.f32.mrb[64].mxu1 }
 0x6a5   :  { %4033 = vpow2.f32 %v2124_v10  ;;  %v2115_v12 = vsub.f32 0.0, %v4706_v11  ;;  %v3648_v20 = vpop.f32.mrb[65].mxu1 }
 0x6a7   :  { %v2126_v24 = vmul.f32 1.442695, %v2115_v12 }
 0x6a8   :  { %v4709_v18 = vpop.f32.mrb[66].mxu1 }
 0x6a9   :  { %4035 = vpow2.f32 %v2126_v24  ;;  %v2116_v43 = vsub.f32 0.0, %v4709_v18  ;;  %v3651_v49 = vpop.f32.mrb[67].mxu1 }
 0x6ab   :  { %v4032_v55 = vpop.eup %4031  ;;  %v2128_v36 = vmul.f32 1.442695, %v2116_v43 }
 0x6ac   :  { %v4712_v40 = vpop.f32.mrb[68].mxu1  ;;  %v2140_v46 = vmul.f32 %v4032_v55, %v4601_v28 }
 0x6ad   :  { %4037 = vpow2.f32 %v2128_v36  ;;  %v2117_v51 = vsub.f32 0.0, %v4712_v40  ;;  %v3654_v56 = vpop.f32.mrb[69].mxu1 }
 0x6af   :  { %v4034_v62 = vpop.eup %4033  ;;  %v2130_v1 = vmul.f32 1.442695, %v2117_v51 }
 0x6b0   :  { %v4716_v3 = vpop.f32.mrb[70].mxu1  ;;  %v2141_v8 = vmul.f32 %v4034_v62, %v4613_v41 }
 0x6b1   :  { %4039 = vpow2.f32 %v2130_v1  ;;  %v2118_v7 = vsub.f32 0.0, %v4716_v3  ;;  %v3657_v10 = vpop.f32.mrb[71].mxu1 }
 0x6b2   :  { %v3909_v12 = vpack.c.bf16 %v2141_v8, %v2140_v46 }
 0x6b3   :  { %v4036_v20 = vpop.eup %4035  ;;  %v2132_v24 = vmul.f32 1.442695, %v2118_v7 }
 0x6b4   :  { %v4720_v43 = vpop.f32.mrb[72].mxu1  ;;  %3910 = vmatpush3.bf16.msra.mxu0 %v3909_v12  ;;  %v2142_v28 = vmul.f32 %v4036_v20, %v4625_v52 }
 0x6b5   :  { %4041 = vpow2.f32 %v2132_v24  ;;  %v2119_v49 = vsub.f32 0.0, %v4720_v43  ;;  %v3660_v55 = vpop.f32.mrb[73].mxu1  ;;  %3911 = vmatprep.subr.bf16.mxu0 %v4115_v27 }
 0x6b7   :  { %v4038_v36 = vpop.eup %4037  ;;  %v2134_v41 = vmul.f32 1.442695, %v2119_v49 }
 0x6b8   :  { %v4725_v51 = vpop.f32.mrb[74].mxu1  ;;  %v2143_v56 = vmul.f32 %v4038_v36, %v4637_v14 }
 0x6b9   :  { %4043 = vpow2.f32 %v2134_v41  ;;  %v2120_v46 = vsub.f32 0.0, %v4725_v51  ;;  %v3663_v62 = vpop.f32.mrb[75].mxu1 }
 0x6ba   :  { %v3912_v1 = vpack.c.bf16 %v2143_v56, %v2142_v28 }
 0x6bb   :  { %v4040_v8 = vpop.eup %4039  ;;  %v2136_v7 = vmul.f32 1.442695, %v2120_v46 }
 0x6bc   :  { %v4729_v52 = vpop.f32.mrb[76].mxu1  ;;  %3913 = vmatpush3.bf16.msra.mxu0 %v3912_v1  ;;  %v2144_v10 = vmul.f32 %v4040_v8, %v4650_v44  ;;  %v2107_v1 = vmul.f32 1.442695, %v4720_v43 }
 0x6bd   :  { %4045 = vpow2.f32 %v2136_v7  ;;  %v2121_v12 = vsub.f32 0.0, %v4729_v52  ;;  %3914 = vmatprep.subr.bf16.mxu0 %v4115_v27  ;;  %v3666_v20 = vpop.f32.mrb[77].mxu1 }
 0x6bf   :  { %v4042_v24 = vpop.eup %4041  ;;  %v2138_v14 = vmul.f32 1.442695, %v2121_v12 }
 0x6c0   :  { %v2145_v49 = vmul.f32 %v4042_v24, %v4661_v5 }
 0x6c1   :  { %4047 = vpow2.f32 %v2138_v14  ;;  %v2111_v14 = vmul.f32 1.442695, %v4729_v52 }
 0x6c2   :  { %v3915_v55 = vpack.c.bf16 %v2145_v49, %v2144_v10  ;;  %v2109_v10 = vmul.f32 1.442695, %v4725_v51 }
 0x6c3   :  { %v4044_v28 = vpop.eup %4043 }
 0x6c4   :  { %3916 = vmatpush3.bf16.msra.mxu0 %v3915_v55  ;;  %v2146_v36 = vmul.f32 %v4044_v28, %v4672_v37 }
 0x6c5   :  { %3917 = vmatprep.subr.bf16.mxu0 %v4115_v27  ;;  %v2095_v27 = vmul.f32 1.442695, %v4700_v58  ;;  %v2105_v58 = vmul.f32 1.442695, %v4716_v3 }
 0x6c7   :  { %v4046_v41 = vpop.eup %4045  ;;  %4049 = vpow2.f32 %v2095_v27 }
 0x6c8   :  { %v2147_v44 = vmul.f32 %v4046_v41, %v4683_v31 }
 0x6ca   :  { %v3918_v56 = vpack.c.bf16 %v2147_v44, %v2146_v36 }
 0x6cb   :  { %v4048_v46 = vpop.eup %4047 }
 0x6cc   :  { %3919 = vmatpush3.bf16.msra.mxu0 %v3918_v56  ;;  %v2148_v62 = vmul.f32 %v4048_v46, %v4694_v48 }
 0x6cd   :  { %3683 = vmatprep.subr.mxu0 %v4113_v50 }
 0x6d0   :  { %3684 = vmatpush3.msra.mxu0 %v2148_v62 }
 0x6d1   :  { %3686 = vmatmul.mubr.msk.f32.vlgmr.msra.gmra.mrb[94].mxu0 %vm1957_vm10, %v4594_v16  ;;  %v2097_v16 = vmul.f32 1.442695, %v4703_v6 }
 0x6d2   :  { %3688 = vmatprep.mubr.msk.f32.mxu0 %vm4114_vm3, %v4113_v50 }
 0x6d3   :  { %4051 = vpow2.f32 %v2097_v16 }
 0x6d5   :  { %3689 = vmatmul.mubr.msk.f32.gmra.mrb[96].mxu0 %vm1957_vm10, %v4605_v39  ;;  %v2099_v39 = vmul.f32 1.442695, %v4706_v11 }
 0x6d6   :  { %3691 = vmatprep.mubr.msk.f32.mxu0 %vm4114_vm3, %v4113_v50 }
 0x6d7   :  { %4053 = vpow2.f32 %v2099_v39 }
 0x6d9   :  { %3692 = vmatmul.mubr.msk.f32.gmra.mrb[98].mxu0 %vm1957_vm10, %v4617_v54  ;;  %v2101_v54 = vmul.f32 1.442695, %v4709_v18 }
 0x6da   :  { %3694 = vmatprep.mubr.msk.f32.mxu0 %vm4114_vm3, %v4113_v50 }
 0x6db   :  { %4055 = vpow2.f32 %v2101_v54 }
 0x6dd   :  { %3695 = vmatmul.mubr.msk.f32.gmra.mrb[100].mxu0 %vm1957_vm10, %v4629_v25  ;;  %v4050_v25 = vpop.eup %4049 }
 0x6de   :  { %3697 = vmatprep.mubr.msk.f32.mxu0 %vm4114_vm3, %v4113_v50 }
 0x6e1   :  { %3698 = vmatmul.mubr.msk.f32.gmra.mrb[102].mxu0 %vm1957_vm10, %v4641_v4 }
 0x6e2   :  { %3700 = vmatprep.mubr.msk.f32.mxu0 %vm4114_vm3, %v4113_v50 }
 0x6e5   :  { %3701 = vmatmul.mubr.msk.f32.gmra.mrb[104].mxu0 %vm1957_vm10, %v4654_v57 }
 0x6e6   :  { %3703 = vmatprep.mubr.msk.f32.mxu0 %vm4114_vm3, %v4113_v50 }
 0x6e9   :  { %3704 = vmatmul.mubr.msk.f32.gmra.mrb[106].mxu0 %vm1957_vm10, %v4665_v53  ;;  %v2103_v53 = vmul.f32 1.442695, %v4712_v40 }
 0x6ea   :  { %3706 = vmatprep.mubr.msk.f32.mxu0 %vm4114_vm3, %v4113_v50 }
 0x6eb   :  { %4057 = vpow2.f32 %v2103_v53 }
 0x6ec   :  { %4059 = vpow2.f32 %v2105_v58 }
 0x6ed   :  { %3707 = vmatmul.mubr.msk.f32.gmra.mrb[108].mxu0 %vm1957_vm10, %v4676_v61  ;;  %v4052_v61 = vpop.eup %4051  ;;  %4061 = vpow2.f32 %v2107_v1 }
 0x6ee   :  { %3709 = vmatprep.mubr.msk.f32.mxu0 %vm4114_vm3, %v4113_v50  ;;  %v4054_v11 = vpop.eup %4053  ;;  %4063 = vpow2.f32 %v2109_v10 }
 0x6ef   :  { %4065 = vpow2.f32 %v2111_v14 }
 0x6f1   :  { %3710 = vmatmul.mubr.msk.f32.gmra.mrb[110].mxu0 %vm1957_vm10, %v4687_v42 }
 0x7a4   :  { %v2215_v4 = vpop.f32.mrb[94].mxu0 }
 0x7a5   :  { %v2259_v57 = vmul.f32 %v4050_v25, %v2215_v4  ;;  %v3687_v5 = vpop.f32.mrb[95].mxu0 }
 0x7a7   :  { %v2268_v37 = vmul.f32 %v2259_v57, %v4607_v45  ;;  %v2977_v57 = vld [vmem:[#allocation2 + $0x3a0] ss:$0 sm:$0xff] }
 0x7a8   :  { %v2220_v31 = vpop.f32.mrb[96].mxu0  ;;  %v1422_v5 = vmul.f32 %v2977_v57, %v4275_v15  ;;  %v1427_v10 = vmul.f32 %v2977_v57, %v4308_v60 }
 0x7a9   :  { %v2260_v42 = vmul.f32 %v4052_v61, %v2220_v31  ;;  %3729 = vmatmul.mubr.msk.f32.vlgmr.msra.gmra.mrb[78].mxu1 %vm2285_vm11, %v2268_v37  ;;  %v3690_v48 = vpop.f32.mrb[97].mxu0  ;;  %v1423_v31 = vmul.f32 %v2977_v57, %v4284_v17 }
 0x7aa   :  { %3780 = vmatpush3.msk.msra.mxu1 %vm787_vm2, %v4177_v63  ;;  %3731 = vmatprep.mubr.msk.f32.mxu1 %vm4114_vm3, %v4113_v50  ;;  %v4056_v63 = vpop.eup %4055 }
 0x7ab   :  { %v2269_v6 = vmul.f32 %v2260_v42, %v4619_v13  ;;  %v4058_v43 = vpop.eup %4057 }
 0x7ac   :  { %v2225_v18 = vpop.f32.mrb[98].mxu0  ;;  %v4060_v51 = vpop.eup %4059 }
 0x7ad   :  { %v2261_v45 = vmul.f32 %v4054_v11, %v2225_v18  ;;  %3732 = vmatmul.mubr.msk.f32.gmra.mrb[80].mxu1 %vm2285_vm11, %v2269_v6  ;;  %v3693_v40 = vpop.f32.mrb[99].mxu0  ;;  %v4062_v41 = vpop.eup %4061 }
 0x7ae   :  { %3734 = vmatprep.mubr.msk.f32.mxu1 %vm4114_vm3, %v4113_v50  ;;  %v4064_v46 = vpop.eup %4063 }
 0x7af   :  { %v2270_v3 = vmul.f32 %v2261_v45, %v4631_v59  ;;  %v4066_v39 = vpop.eup %4065  ;;  %v1425_v45 = vmul.f32 %v2977_v57, %v4296_v21 }
 0x7b0   :  { %v2230_v8 = vpop.f32.mrb[100].mxu0 }
 0x7b1   :  { %v2262_v7 = vmul.f32 %v4056_v63, %v2230_v8  ;;  %3735 = vmatmul.mubr.msk.f32.gmra.mrb[82].mxu1 %vm2285_vm11, %v2270_v3  ;;  %v3696_v13 = vpop.f32.mrb[101].mxu0  ;;  %v1426_v63 = vmul.f32 %v2977_v57, %v4302_v23 }
 0x7b2   :  { %3737 = vmatprep.mubr.msk.f32.mxu1 %vm4114_vm3, %v4113_v50 }
 0x7b3   :  { %v2271_v12 = vmul.f32 %v2262_v7, %v4643_v2 }
 0x7b4   :  { %v2235_v20 = vpop.f32.mrb[102].mxu0 }
 0x7b5   :  { %v2263_v24 = vmul.f32 %v4058_v43, %v2235_v20  ;;  %3738 = vmatmul.mubr.msk.f32.gmra.mrb[84].mxu1 %vm2285_vm11, %v2271_v12  ;;  %v3699_v59 = vpop.f32.mrb[103].mxu0 }
 0x7b6   :  { %3740 = vmatprep.mubr.msk.f32.mxu1 %vm4114_vm3, %v4113_v50 }
 0x7b7   :  { %v2272_v49 = vmul.f32 %v2263_v24, %v4656_v0  ;;  %v1428_v24 = vmul.f32 %v2977_v57, %v4314_v26 }
 0x7b8   :  { %v2240_v55 = vpop.f32.mrb[104].mxu0 }
 0x7b9   :  { %v2264_v28 = vmul.f32 %v4060_v51, %v2240_v55  ;;  %3741 = vmatmul.mubr.msk.f32.gmra.mrb[86].mxu1 %vm2285_vm11, %v2272_v49  ;;  %v3702_v2 = vpop.f32.mrb[105].mxu0  ;;  %v1429_v51 = vmul.f32 %v2977_v57, %v4320_v30 }
 0x7ba   :  { %3743 = vmatprep.mubr.msk.f32.mxu1 %vm4114_vm3, %v4113_v50 }
 0x7bb   :  { %v2273_v36 = vmul.f32 %v2264_v28, %v4667_v22 }
 0x7bc   :  { %v2245_v44 = vpop.f32.mrb[106].mxu0 }
 0x7bd   :  { %v2265_v52 = vmul.f32 %v4062_v41, %v2245_v44  ;;  %3744 = vmatmul.mubr.msk.f32.gmra.mrb[88].mxu1 %vm2285_vm11, %v2273_v36  ;;  %v3705_v56 = vpop.f32.mrb[107].mxu0  ;;  %v1430_v36 = vmul.f32 %v2977_v57, %v4326_v33 }
 0x7be   :  { %3746 = vmatprep.mubr.msk.f32.mxu1 %vm4114_vm3, %v4113_v50 }
 0x7bf   :  { %v2274_v0 = vmul.f32 %v2265_v52, %v4678_v47 }
 0x7c0   :  { %v2250_v62 = vpop.f32.mrb[108].mxu0 }
 0x7c1   :  { %v2266_v27 = vmul.f32 %v4064_v46, %v2250_v62  ;;  %3747 = vmatmul.mubr.msk.f32.gmra.mrb[90].mxu1 %vm2285_vm11, %v2274_v0  ;;  %v3708_v16 = vpop.f32.mrb[109].mxu0 }
 0x7c2   :  { %3749 = vmatprep.mubr.msk.f32.mxu1 %vm4114_vm3, %v4113_v50 }
 0x7c3   :  { %v2275_v22 = vmul.f32 %v2266_v27, %v4689_v38 }
 0x7c4   :  { %v2255_v54 = vpop.f32.mrb[110].mxu0 }
 0x7c5   :  { %v2267_v25 = vmul.f32 %v4066_v39, %v2255_v54  ;;  %3750 = vmatmul.mubr.msk.f32.gmra.mrb[92].mxu1 %vm2285_vm11, %v2275_v22  ;;  %v3711_v4 = vpop.f32.mrb[111].mxu0 }
 0x7c6   :  { %3752 = vmatprep.mubr.msk.f32.mxu1 %vm4114_vm3, %v4113_v50 }
 0x7c7   :  { %v2276_v47 = vmul.f32 %v2267_v25, %v4698_v9  ;;  %v1424_v9 = vmul.f32 %v2977_v57, %v4290_v19 }
 0x7c9   :  { %3753 = vmatmul.mubr.msk.f32.gmra.mrb[94].mxu1 %vm2285_vm11, %v2276_v47 }
 0x87c   :  { %v2379_v53 = vpop.f32.mrb[78].mxu1 }
 0x87d   :  { %v2423_v37 = vadd.f32 %v2379_v53, %v1422_v5  ;;  %v3730_v61 = vpop.f32.mrb[79].mxu1 }
 0x87f   :  { %v2432_v38 = vsel %vm1040_vm6, %v2423_v37, 0.0 }
 0x880   :  { %2433 = vadd.xlane.f32.xlu0 %v2432_v38  ;;  %v2384_v42 = vpop.f32.mrb[80].mxu1 }
 0x881   :  { %v2424_v48 = vadd.f32 %v2384_v42, %v1423_v31  ;;  %v3733_v58 = vpop.f32.mrb[81].mxu1 }
 0x883   :  { %v2435_v50 = vsel %vm1040_vm6, %v2424_v48, 0.0 }
 0x884   :  { %2436 = vadd.xlane.f32.xlu0 %v2435_v50  ;;  %v2389_v6 = vpop.f32.mrb[82].mxu1 }
 0x885   :  { %v2425_v11 = vadd.f32 %v2389_v6, %v1424_v9  ;;  %v3736_v18 = vpop.f32.mrb[83].mxu1 }
 0x887   :  { %v2438_v15 = vsel %vm1040_vm6, %v2425_v11, 0.0 }
 0x888   :  { %2439 = vadd.xlane.f32.xlu1 %v2438_v15  ;;  %v2394_v40 = vpop.f32.mrb[84].mxu1 }
 0x889   :  { %v2426_v1 = vadd.f32 %v2394_v40, %v1425_v45  ;;  %v3739_v17 = vpop.f32.mrb[85].mxu1 }
 0x88b   :  { %v2441_v3 = vsel %vm1040_vm6, %v2426_v1, 0.0 }
 0x88c   :  { %2442 = vadd.xlane.f32.xlu1 %v2441_v3  ;;  %v2399_v8 = vpop.f32.mrb[86].mxu1 }
 0x88d   :  { %v2427_v7 = vadd.f32 %v2399_v8, %v1426_v63  ;;  %v3742_v19 = vpop.f32.mrb[87].mxu1 }
 0x88f   :  { %v2444_v13 = vsel %vm1040_vm6, %v2427_v7, 0.0 }
 0x890   :  { %2445 = vadd.xlane.f32.xlu0 %v2444_v13  ;;  %v2404_v12 = vpop.f32.mrb[88].mxu1 }
 0x891   :  { %v2428_v43 = vadd.f32 %v2404_v12, %v1427_v10  ;;  %v3745_v21 = vpop.f32.mrb[89].mxu1 }
 0x893   :  { %v2447_v20 = vsel %vm1040_vm6, %v2428_v43, 0.0 }
 0x894   :  { %2448 = vadd.xlane.f32.xlu1 %v2447_v20  ;;  %v2409_v59 = vpop.f32.mrb[90].mxu1 }
 0x895   :  { %v2429_v14 = vadd.f32 %v2409_v59, %v1428_v24  ;;  %v3748_v23 = vpop.f32.mrb[91].mxu1  ;;  %v2578_v24 = vld [vmem:[#allocation2 + $0x440] sm:$0xff] }
 0x896   :  { %3773 = vmatprep.mubr.msk.f32.mxu0 %vm1957_vm10, %v2578_v24  ;;  %v2683_v59 = vld [vmem:[#allocation2 + $0x460] sm:$0xff]  ;;  %v2685_v23 = vld [vmem:[#allocation2 + $0x470] sm:$0xff] }
 0x897   :  { %v2450_v49 = vsel %vm1040_vm6, %v2429_v14, 0.0  ;;  %3781 = vmatprep.mubr.msk.f32.mxu1 %vm759_vm4, %v2683_v59 }
 0x898   :  { %2451 = vadd.xlane.f32.xlu0 %v2450_v49  ;;  %v2414_v55 = vpop.f32.mrb[92].mxu1  ;;  %v2686_v49 = vld [vmem:[#allocation2 + $0x478] sm:$0xff] }
 0x899   :  { %v2430_v28 = vadd.f32 %v2414_v55, %v1429_v51  ;;  %v3751_v60 = vpop.f32.mrb[93].mxu1 }
 0x89b   :  { %v2453_v2 = vsel %vm1040_vm6, %v2430_v28, 0.0 }
 0x89c   :  { %2454 = vadd.xlane.f32.xlu1 %v2453_v2  ;;  %v2419_v41 = vpop.f32.mrb[94].mxu1 }
 0x89d   :  { %v2431_v44 = vadd.f32 %v2419_v41, %v1430_v36  ;;  %v3754_v26 = vpop.f32.mrb[95].mxu1 }
 0x89f   :  { %v2456_v52 = vsel %vm1040_vm6, %v2431_v44, 0.0 }
 0x8a0   :  { %2457 = vadd.xlane.f32.xlu0 %v2456_v52 }
 0x90d   :  { %v2434_v56 = vpop.xlane.xlu0 %2433 }
 0x90e   :  { %v2460_v0 = vmul.f32 0.0625, %v2434_v56 }
 0x910   :  { %v4837_v46 = vsub.f32 %v2423_v37, %v2460_v0 }
 0x911   :  { %v2437_v30 = vpop.xlane.xlu0 %2436 }
 0x912   :  { %v2461_v62 = vmul.f32 0.0625, %v2437_v30  ;;  %v2478_v27 = vmul.f32 %v4837_v46, %v4837_v46 }
 0x914   :  { %v4841_v16 = vsub.f32 %v2424_v48, %v2461_v62  ;;  %v2487_v33 = vsel %vm1040_vm6, %v2478_v27, 0.0 }
 0x915   :  { %v2440_v22 = vpop.xlane.xlu1 %2439  ;;  %2488 = vadd.xlane.f32.xlu1 %v2487_v33 }
 0x916   :  { %v2462_v39 = vmul.f32 0.0625, %v2440_v22  ;;  %v2479_v54 = vmul.f32 %v4841_v16, %v4841_v16  ;;  %v3043_v22 = vld [vmem:[#allocation2 + $0x3a8] ss:$0 sm:$0xff] }
 0x918   :  { %v4846_v25 = vsub.f32 %v2425_v11, %v2462_v39  ;;  %v2490_v4 = vsel %vm1040_vm6, %v2479_v54, 0.0 }
 0x919   :  { %v2443_v47 = vpop.xlane.xlu1 %2442  ;;  %2491 = vadd.xlane.f32.xlu0 %v2490_v4 }
 0x91a   :  { %v2463_v57 = vmul.f32 0.0625, %v2443_v47  ;;  %v2480_v5 = vmul.f32 %v4846_v25, %v4846_v25 }
 0x91c   :  { %v4851_v53 = vsub.f32 %v2426_v1, %v2463_v57  ;;  %v2493_v37 = vsel %vm1040_vm6, %v2480_v5, 0.0 }
 0x91d   :  { %v2446_v61 = vpop.xlane.xlu0 %2445  ;;  %2494 = vadd.xlane.f32.xlu1 %v2493_v37  ;;  %v3044_v37 = vld [vmem:[#allocation2 + $0x3b0] ss:$0 sm:$0xff] }
 0x91e   :  { %v2464_v38 = vmul.f32 0.0625, %v2446_v61  ;;  %v2481_v31 = vmul.f32 %v4851_v53, %v4851_v53 }
 0x920   :  { %v4856_v42 = vsub.f32 %v2427_v7, %v2464_v38  ;;  %v2496_v48 = vsel %vm1040_vm6, %v2481_v31, 0.0 }
 0x921   :  { %v2449_v58 = vpop.xlane.xlu1 %2448  ;;  %2497 = vadd.xlane.f32.xlu0 %v2496_v48 }
 0x922   :  { %v2465_v50 = vmul.f32 0.0625, %v2449_v58  ;;  %v2482_v9 = vmul.f32 %v4856_v42, %v4856_v42 }
 0x924   :  { %v4861_v6 = vsub.f32 %v2428_v43, %v2465_v50  ;;  %v2499_v11 = vsel %vm1040_vm6, %v2482_v9, 0.0 }
 0x925   :  { %v2452_v18 = vpop.xlane.xlu0 %2451  ;;  %2500 = vadd.xlane.f32.xlu1 %v2499_v11 }
 0x926   :  { %v2466_v15 = vmul.f32 0.0625, %v2452_v18  ;;  %v2483_v45 = vmul.f32 %v4861_v6, %v4861_v6 }
 0x928   :  { %v4866_v40 = vsub.f32 %v2429_v14, %v2466_v15  ;;  %v2502_v1 = vsel %vm1040_vm6, %v2483_v45, 0.0  ;;  %v2684_v14 = vld [vmem:[#allocation2 + $0x468] sm:$0xff] }
 0x929   :  { %v2455_v17 = vpop.xlane.xlu1 %2454  ;;  %2503 = vadd.xlane.f32.xlu0 %v2502_v1  ;;  %3782 = vmatmul.mubr.msk.f32.vlgmr.msra.gmra.mrb[96].mxu1 %vm759_vm4, %v2684_v14 }
 0x92a   :  { %v2467_v3 = vmul.f32 0.0625, %v2455_v17  ;;  %v2484_v63 = vmul.f32 %v4866_v40, %v4866_v40  ;;  %3784 = vmatprep.mubr.msk.f32.mxu1 %vm759_vm4, %v2685_v23 }
 0x92c   :  { %v4871_v8 = vsub.f32 %v2430_v28, %v2467_v3  ;;  %v2505_v7 = vsel %vm1040_vm6, %v2484_v63, 0.0 }
 0x92d   :  { %2506 = vadd.xlane.f32.xlu1 %v2505_v7  ;;  %v2458_v19 = vpop.xlane.xlu0 %2457  ;;  %3785 = vmatmul.mubr.msk.f32.gmra.mrb[98].mxu1 %vm759_vm4, %v2686_v49 }
 0x92e   :  { %v2468_v13 = vmul.f32 0.0625, %v2458_v19  ;;  %v2485_v10 = vmul.f32 %v4871_v8, %v4871_v8 }
 0x930   :  { %v4876_v12 = vsub.f32 %v2431_v44, %v2468_v13  ;;  %v2508_v43 = vsel %vm1040_vm6, %v2485_v10, 0.0 }
 0x931   :  { %2509 = vadd.xlane.f32.xlu0 %v2508_v43 }
 0x932   :  { %v2486_v21 = vmul.f32 %v4876_v12, %v4876_v12 }
 0x934   :  { %v2511_v20 = vsel %vm1040_vm6, %v2486_v21, 0.0 }
 0x935   :  { %2512 = vadd.xlane.f32.xlu1 %v2511_v20 }
 0x9a2   :  { %v2489_v51 = vpop.xlane.xlu1 %2488 }
 0x9a3   :  { %v2514_v55 = vmul.f32 0.0625, %v2489_v51 }
 0x9a5   :  { %v2523_v28 = vadd.f32 1e-05, %v2514_v55 }
 0x9a6   :  { %v2492_v60 = vpop.xlane.xlu0 %2491 }
 0x9a7   :  { %4067 = vrsqrt.f32 %v2523_v28  ;;  %v2515_v2 = vmul.f32 0.0625, %v2492_v60 }
 0x9a9   :  { %v2524_v36 = vadd.f32 1e-05, %v2515_v2 }
 0x9aa   :  { %v2495_v41 = vpop.xlane.xlu1 %2494 }
 0x9ab   :  { %4069 = vrsqrt.f32 %v2524_v36  ;;  %v2516_v44 = vmul.f32 0.0625, %v2495_v41 }
 0x9ad   :  { %v2525_v26 = vadd.f32 1e-05, %v2516_v44 }
 0x9ae   :  { %v2498_v52 = vpop.xlane.xlu0 %2497 }
 0x9af   :  { %4071 = vrsqrt.f32 %v2525_v26  ;;  %v2517_v56 = vmul.f32 0.0625, %v2498_v52 }
 0x9b1   :  { %v4068_v0 = vpop.eup %4067  ;;  %v2526_v30 = vadd.f32 1e-05, %v2517_v56 }
 0x9b2   :  { %v2501_v62 = vpop.xlane.xlu1 %2500  ;;  %v2541_v27 = vmul.f32 %v4068_v0, %v4837_v46 }
 0x9b3   :  { %4073 = vrsqrt.f32 %v2526_v30  ;;  %v2518_v33 = vmul.f32 0.0625, %v2501_v62  ;;  %v2580_v30 = vld [vmem:[#allocation2 + $0x450] sm:$0xff]  ;;  %v2804_v62 = vld [vmem:[#allocation2 + $0x4a0] sm:$0xff] }
 0x9b4   :  { %v2555_v57 = vmul.f32 %v3043_v22, %v2541_v27  ;;  %v2805_v27 = vld [vmem:[#allocation2 + $0x4a8] sm:$0xff] }
 0x9b5   :  { %v4070_v39 = vpop.eup %4069  ;;  %v2527_v54 = vadd.f32 1e-05, %v2518_v33  ;;  %v3948_v33 = vpack.c.bf16 %v2805_v27, %v2804_v62 }
 0x9b6   :  { %v2504_v4 = vpop.xlane.xlu0 %2503  ;;  %v2542_v47 = vmul.f32 %v4070_v39, %v4841_v16  ;;  %v2569_v58 = vadd.f32 %v3044_v37, %v2555_v57  ;;  %v2784_v39 = vld [vmem:[#allocation2 + $0x480] sm:$0xff]  ;;  %v2786_v57 = vld [vmem:[#allocation2 + $0x490] sm:$0xff] }
 0x9b7   :  { %4075 = vrsqrt.f32 %v2527_v54  ;;  %v2519_v5 = vmul.f32 0.0625, %v2504_v4  ;;  %v2787_v54 = vld [vmem:[#allocation2 + $0x498] sm:$0xff] }
 0x9b8   :  { %v2556_v61 = vmul.f32 %v3043_v22, %v2542_v47 }
 0x9b9   :  { %v4072_v38 = vpop.eup %4071  ;;  %v2528_v31 = vadd.f32 1e-05, %v2519_v5 }
 0x9ba   :  { %v2507_v48 = vpop.xlane.xlu1 %2506  ;;  %v2570_v50 = vadd.f32 %v3044_v37, %v2556_v61  ;;  %v2543_v46 = vmul.f32 %v4072_v38, %v4846_v25 }
 0x9bb   :  { %4077 = vrsqrt.f32 %v2528_v31  ;;  %v2520_v9 = vmul.f32 0.0625, %v2507_v48 }
 0x9bc   :  { %v3932_v11 = vpack.c.bf16 %v2570_v50, %v2569_v58  ;;  %v2557_v1 = vmul.f32 %v3043_v22, %v2543_v46 }
 0x9bd   :  { %v4074_v18 = vpop.eup %4073  ;;  %v2529_v15 = vadd.f32 1e-05, %v2520_v9 }
 0x9be   :  { %3933 = vmatprep.subr.bf16.mxu0 %v3932_v11  ;;  %v2510_v45 = vpop.xlane.xlu0 %2509  ;;  %v2544_v16 = vmul.f32 %v4074_v18, %v4851_v53  ;;  %v2571_v13 = vadd.f32 %v3044_v37, %v2557_v1 }
 0x9bf   :  { %4079 = vrsqrt.f32 %v2529_v15  ;;  %v2521_v17 = vmul.f32 0.0625, %v2510_v45  ;;  %3935 = vmatpush3.bf16.msra.mxu0 %v3932_v11 }
 0x9c0   :  { %v2558_v3 = vmul.f32 %v3043_v22, %v2544_v16 }
 0x9c1   :  { %v4076_v63 = vpop.eup %4075  ;;  %v2530_v7 = vadd.f32 1e-05, %v2521_v17 }
 0x9c2   :  { %v2513_v19 = vpop.xlane.xlu1 %2512  ;;  %v2572_v10 = vadd.f32 %v3044_v37, %v2558_v3  ;;  %v2545_v25 = vmul.f32 %v4076_v63, %v4856_v42 }
 0x9c3   :  { %4081 = vrsqrt.f32 %v2530_v7  ;;  %v2522_v43 = vmul.f32 0.0625, %v2513_v19 }
 0x9c4   :  { %v3936_v21 = vpack.c.bf16 %v2572_v10, %v2571_v13  ;;  %v2559_v59 = vmul.f32 %v3043_v22, %v2545_v25 }
 0x9c5   :  { %v4078_v20 = vpop.eup %4077  ;;  %v2531_v24 = vadd.f32 1e-05, %v2522_v43 }
 0x9c6   :  { %3937 = vmatprep.subr.bf16.mxu0 %v3936_v21  ;;  %v2546_v53 = vmul.f32 %v4078_v20, %v4861_v6  ;;  %v2573_v49 = vadd.f32 %v3044_v37, %v2559_v59 }
 0x9c7   :  { %4083 = vrsqrt.f32 %v2531_v24  ;;  %3939 = vmatpush3.bf16.msra.mxu0 %v3936_v21 }
 0x9c8   :  { %v2560_v14 = vmul.f32 %v3043_v22, %v2546_v53 }
 0x9c9   :  { %v4080_v23 = vpop.eup %4079 }
 0x9ca   :  { %v2574_v51 = vadd.f32 %v3044_v37, %v2560_v14  ;;  %v2547_v55 = vmul.f32 %v4080_v23, %v4866_v40  ;;  %v2579_v40 = vld [vmem:[#allocation2 + $0x448] sm:$0xff] }
 0x9cc   :  { %v3940_v28 = vpack.c.bf16 %v2574_v51, %v2573_v49  ;;  %v2561_v2 = vmul.f32 %v3043_v22, %v2547_v55 }
 0x9cd   :  { %v4082_v60 = vpop.eup %4081 }
 0x9ce   :  { %3941 = vmatprep.subr.bf16.mxu0 %v3940_v28  ;;  %v2548_v42 = vmul.f32 %v4082_v60, %v4871_v8  ;;  %v2575_v44 = vadd.f32 %v3044_v37, %v2561_v2  ;;  %v2581_v8 = vld [vmem:[#allocation2 + $0x458] sm:$0xff] }
 0x9cf   :  { %3943 = vmatpush3.bf16.msra.mxu0 %v3940_v28 }
 0x9d0   :  { %v2562_v36 = vmul.f32 %v3043_v22, %v2548_v42 }
 0x9d1   :  { %v4084_v41 = vpop.eup %4083 }
 0x9d2   :  { %v2576_v6 = vadd.f32 %v3044_v37, %v2562_v36  ;;  %v2549_v26 = vmul.f32 %v4084_v41, %v4876_v12 }
 0x9d4   :  { %v3944_v52 = vpack.c.bf16 %v2576_v6, %v2575_v44  ;;  %v2563_v56 = vmul.f32 %v3043_v22, %v2549_v26  ;;  %v2785_v22 = vld [vmem:[#allocation2 + $0x488] sm:$0xff] }
 0x9d6   :  { %3945 = vmatprep.subr.bf16.mxu0 %v3944_v52  ;;  %v2577_v0 = vadd.f32 %v3044_v37, %v2563_v56 }
 0x9d7   :  { %3947 = vmatpush3.bf16.msra.mxu0 %v3944_v52 }
 0x9d8   :  { %3771 = vmatprep.subr.mxu0 %v2577_v0 }
 0x9db   :  { %3772 = vmatpush3.msra.mxu0 %v2577_v0 }
 0x9dc   :  { %3774 = vmatmul.mubr.msk.f32.vlgmr.msra.gmra.mrb[112].mxu0 %vm1957_vm10, %v2579_v40  ;;  %3949 = vmatprep.subr.bf16.mxu0 %v3948_v33 }
 0x9dd   :  { %3776 = vmatprep.mubr.msk.f32.mxu0 %vm1957_vm10, %v2580_v30  ;;  %3951 = vmatpush3.bf16.msra.mxu0 %v3948_v33 }
 0x9e0   :  { %3777 = vmatmul.mubr.msk.f32.gmra.mrb[114].mxu0 %vm1957_vm10, %v2581_v8 }
 0x9fc   :  { %v3783_v12 = vpop.f32.mrb[96].mxu1 }
 0x9fd   :  { %v2789_v4 = vmul.f32 %v3783_v12, %v2785_v22  ;;  %v2765_v47 = vpop.f32.mrb[97].mxu1 }
 0x9fe   :  { %v2788_v5 = vmul.f32 %v2784_v39, %v2765_v47 }
 0x9ff   :  { %v2795_v61 = vsel %vm1040_vm6, %v2789_v4, 0.0 }
 0xa00   :  { %v3786_v37 = vpop.f32.mrb[98].mxu1  ;;  %2796 = vadd.xlane.f32.xlu1 %v2795_v61  ;;  %v2792_v48 = vsel %vm1040_vm6, %v2788_v5, 0.0 }
 0xa01   :  { %v2791_v38 = vmul.f32 %v3786_v37, %v2787_v54  ;;  %v2775_v31 = vpop.f32.mrb[99].mxu1  ;;  %2793 = vadd.xlane.f32.xlu0 %v2792_v48 }
 0xa02   :  { %v2790_v58 = vmul.f32 %v2786_v57, %v2775_v31 }
 0xa03   :  { %v2801_v50 = vsel %vm1040_vm6, %v2791_v38, 0.0 }
 0xa04   :  { %v2798_v46 = vsel %vm1040_vm6, %v2790_v58, 0.0  ;;  %2802 = vadd.xlane.f32.xlu1 %v2801_v50 }
 0xa05   :  { %2799 = vadd.xlane.f32.xlu0 %v2798_v46 }
 0xa8d   :  { %v2797_v3 = vpop.xlane.xlu1 %2796 }
 0xa8e   :  { %v2794_v63 = vpop.xlane.xlu0 %2793 }
 0xa91   :  { %v2803_v13 = vpop.xlane.xlu1 %2802 }
 0xaaf   :  { %v3775_v9 = vpop.f32.mrb[112].mxu0 }
 0xab0   :  { %v2680_v11 = vmul.f32 %v3775_v9, %v4229_v29  ;;  %v2660_v18 = vpop.f32.mrb[113].mxu0 }
 0xab1   :  { %v2679_v15 = vmul.f32 %v2660_v18, %v4231_v32 }
 0xab3   :  { %v3778_v45 = vpop.f32.mrb[114].mxu0  ;;  %3791 = vmatprep.mubr.msk.f32.mxu0 %vm1040_vm6, %v2679_v15 }
 0xab4   :  { %v2682_v16 = vmul.f32 %v3778_v45, %v4233_v34  ;;  %v2670_v1 = vpop.f32.mrb[115].mxu0  ;;  %3792 = vmatmul.mubr.msk.f32.vlgmr.msra.gmra.mrb[116].mxu0 %vm1040_vm6, %v2680_v11  ;;  %v2800_v34 = vpop.xlane.xlu0 %2799 }
 0xab5   :  { %v2681_v17 = vmul.f32 %v2670_v1, %v4235_v35 }
 0xab7   :  { %3794 = vmatprep.mubr.msk.f32.mxu0 %vm1040_vm6, %v2681_v17 }
 0xab8   :  { %3795 = vmatmul.mubr.msk.f32.gmra.mrb[118].mxu0 %vm1040_vm6, %v2682_v16 }
 0xb87   :  { %v3793_v29 = vpop.f32.mrb[116].mxu0 }
 0xb88   :  { %v2890_v7 = vadd.f32 %v3793_v29, %v2797_v3  ;;  %v2884_v19 = vpop.f32.mrb[117].mxu0 }
 0xb89   :  { %v2885_v32 = vadd.f32 %v2884_v19, %v2794_v63 }
 0xb8a   :  { %2904 = vst.msk [vmem:[%s4930_s3 + $0x8] sm:$0xff] %vm265_vm0, %v2890_v7 }
 0xb8b   :  { %2903 = vst.msk [vmem:[%s4930_s3] sm:$0xff] %vm265_vm0, %v2885_v32  ;;  %v3796_v35 = vpop.f32.mrb[118].mxu0 }
 0xb8c   :  { %v2900_v10 = vadd.f32 %v3796_v35, %v2803_v13  ;;  %v2894_v25 = vpop.f32.mrb[119].mxu0 }
 0xb8d   :  { %v2895_v43 = vadd.f32 %v2894_v25, %v2800_v34 }
 0xb8e   :  { %2906 = vst.msk [vmem:[%s4930_s3 + $0x18] sm:$0xff] %vm265_vm0, %v2900_v10 }
 0xb8f   :  { %2905 = vst.msk [vmem:[%s4930_s3 + $0x10] sm:$0xff] %vm265_vm0, %v2895_v43 }
 0xb90   :  { %2911 = vsyncpa [#allocation3], 1 }

</bundles_post_ra>
